<compile_context>
chip_gen: v7x
topology: tpu7x:2x2x1
jax: 0.10.0
libtpu: 0.0.40
codegen_flags: <defaults>
</compile_context>

<pallas_src>
import functools
import math

import jax
import jax.numpy as jnp
from jax.experimental import pallas as pl
from jax.experimental.pallas import tpu as pltpu

# Keep f32 matmuls at full precision on TPU so the Pallas kernels and the pure
# XLA reference agree tightly.
jax.config.update("jax_default_matmul_precision", "highest")


# ----------------------------------------------------------------------------
# In-kernel math helpers
# ----------------------------------------------------------------------------
def _erf(x):
    # Abramowitz & Stegun 7.1.26 rational approximation, |abs err| <= 1.5e-7
    # (fp32-exact for our purposes).  Uses only exp / mul / add / div so it is
    # guaranteed to lower in Mosaic without relying on a lax.erf rule.
    p = 0.3275911
    a1, a2, a3, a4, a5 = (0.254829592, -0.284496736, 1.421413741,
                          -1.453152027, 1.061405429)
    ax = jnp.abs(x)
    t = 1.0 / (1.0 + p * ax)
    poly = ((((a5 * t + a4) * t + a3) * t + a2) * t + a1) * t
    y = 1.0 - poly * jnp.exp(-ax * ax)
    return jnp.where(x < 0, -y, y)


def _gelu_exact(x):
    # erf-based GELU (matches HF ACT2FN['gelu'] / torch F.gelu default).
    return x * 0.5 * (1.0 + _erf(x * (1.0 / math.sqrt(2.0))))


def _layernorm(x, gamma, beta, eps):
    mean = jnp.mean(x, axis=-1, keepdims=True)
    c = x - mean
    var = jnp.mean(c * c, axis=-1, keepdims=True)
    inv = jax.lax.rsqrt(var + jnp.float32(eps))
    return c * inv * gamma + beta


# ----------------------------------------------------------------------------
# Kernels
# ----------------------------------------------------------------------------
def _attn_block_kernel(hs_ref, kv_ref, mask_ref,
                       wq_ref, bq_ref, wk_ref, bk_ref, wv_ref, bv_ref,
                       wo_ref, bo_ref, g_ref, b_ref,
                       out_ref, *, num_heads, head_dim, eps):
    """Fused multi-head attention + output dense + residual + LayerNorm.

    Per grid step (one batch row):
      hs_ref   : (1, T, H)   query-side hidden states (also the residual)
      kv_ref   : (1, S, E)   K/V source (hidden states or encoder states)
      mask_ref : (1, 1, S)   additive attention mask (0 / -1e4)
      w*_ref   : pre-transposed (in, out) linear weights, b*_ref: (1, out)
      out_ref  : (1, T, H)
    """
    f32 = jnp.float32
    hs = hs_ref[0].astype(f32)                       # (T, H)
    kv = kv_ref[0].astype(f32)                       # (S, E)
    mask = mask_ref[0].astype(f32)                   # (1, S)

    q = jnp.dot(hs, wq_ref[...].astype(f32),
                preferred_element_type=f32) + bq_ref[...].astype(f32)
    k = jnp.dot(kv, wk_ref[...].astype(f32),
                preferred_element_type=f32) + bk_ref[...].astype(f32)
    v = jnp.dot(kv, wv_ref[...].astype(f32),
                preferred_element_type=f32) + bv_ref[...].astype(f32)

    wo = wo_ref[...].astype(f32)                     # (H, H)
    scale = 1.0 / math.sqrt(head_dim)
    T = hs.shape[0]
    H_out = wo.shape[1]

    # Per-head attention; the output projection is accumulated head-by-head
    # (sum_h ctx_h @ Wo[h*dh:(h+1)*dh, :] == concat(ctx) @ Wo), which avoids a
    # minor-dim concatenate of narrow tiles.
    acc = jnp.zeros((T, H_out), f32)
    for h in range(num_heads):
        lo = h * head_dim
        qh = q[:, lo:lo + head_dim]                  # (T, dh)
        kh = k[:, lo:lo + head_dim]                  # (S, dh)
        vh = v[:, lo:lo + head_dim]                  # (S, dh)
        s = jax.lax.dot_general(qh, kh, (((1,), (1,)), ((), ())),
                                preferred_element_type=f32) * scale + mask
        s = s - jnp.max(s, axis=-1, keepdims=True)
        p = jnp.exp(s)
        p = p / jnp.sum(p, axis=-1, keepdims=True)   # softmax over keys
        ctx_h = jnp.dot(p, vh, preferred_element_type=f32)          # (T, dh)
        acc = acc + jnp.dot(ctx_h, wo[lo:lo + head_dim, :],
                            preferred_element_type=f32)

    proj = acc + bo_ref[...].astype(f32)
    y = _layernorm(proj + hs, g_ref[...].astype(f32), b_ref[...].astype(f32),
                   eps)
    out_ref[0] = y.astype(out_ref.dtype)             # single lane-dense store


def _ffn_block_kernel(x_ref, w1_ref, b1_ref, w2_ref, b2_ref, g_ref, b_ref,
                      out_ref, *, eps):
    """intermediate_query (dense+gelu) + output_query (dense+residual+LN)."""
    f32 = jnp.float32
    x = x_ref[0].astype(f32)                                         # (T, H)
    h = jnp.dot(x, w1_ref[...].astype(f32),
                preferred_element_type=f32) + b1_ref[...].astype(f32)
    h = _gelu_exact(h)
    y = jnp.dot(h, w2_ref[...].astype(f32),
                preferred_element_type=f32) + b2_ref[...].astype(f32)
    y = _layernorm(y + x, g_ref[...].astype(f32), b_ref[...].astype(f32), eps)
    out_ref[0] = y.astype(out_ref.dtype)


# ----------------------------------------------------------------------------
# pallas_call wrappers
# ----------------------------------------------------------------------------
def _resident(shape):
    # Constant index map -> block is not re-fetched across the batch grid.
    return pl.BlockSpec(shape, lambda bb: (0,) * len(shape))


def _attn_block(hs, kv, mask, wq, bq, wk, bk, wv, bv, wo, bo, g, b,
                *, num_heads, eps):
    B, T, H = hs.shape
    _, S, E = kv.shape
    head_dim = H // num_heads
    kernel = functools.partial(_attn_block_kernel, num_heads=num_heads,
                               head_dim=head_dim, eps=eps)
    return pl.pallas_call(
        kernel,
        out_shape=jax.ShapeDtypeStruct((B, T, H), hs.dtype),
        grid=(B,),
        in_specs=[
            pl.BlockSpec((1, T, H), lambda bb: (bb, 0, 0)),   # hidden states
            pl.BlockSpec((1, S, E), lambda bb: (bb, 0, 0)),   # K/V source
            pl.BlockSpec((1, 1, S), lambda bb: (bb, 0, 0)),   # additive mask
            _resident((H, H)), _resident((1, H)),             # Wq, bq
            _resident((E, H)), _resident((1, H)),             # Wk, bk
            _resident((E, H)), _resident((1, H)),             # Wv, bv
            _resident((H, H)), _resident((1, H)),             # Wo, bo
            _resident((1, H)), _resident((1, H)),             # LN gamma, beta
        ],
        out_specs=pl.BlockSpec((1, T, H), lambda bb: (bb, 0, 0)),
        compiler_params=pltpu.CompilerParams(
            dimension_semantics=("parallel",)),
    )(hs, kv, mask, wq, bq, wk, bk, wv, bv, wo, bo, g, b)


def _ffn_block(x, w1, b1, w2, b2, g, b, *, eps):
    B, T, H = x.shape
    inter = w1.shape[1]
    kernel = functools.partial(_ffn_block_kernel, eps=eps)
    return pl.pallas_call(
        kernel,
        out_shape=jax.ShapeDtypeStruct((B, T, H), x.dtype),
        grid=(B,),
        in_specs=[
            pl.BlockSpec((1, T, H), lambda bb: (bb, 0, 0)),
            _resident((H, inter)), _resident((1, inter)),
            _resident((inter, H)), _resident((1, H)),
            _resident((1, H)), _resident((1, H)),
        ],
        out_specs=pl.BlockSpec((1, T, H), lambda bb: (bb, 0, 0)),
        compiler_params=pltpu.CompilerParams(
            dimension_semantics=("parallel",)),
    )(x, w1, b1, w2, b2, g, b)


def _attn_params(params, prefix):
    return tuple(params[f"{prefix}_{n}"] for n in
                 ("wq", "bq", "wk", "bk", "wv", "bv", "wo", "bo",
                  "ln_g", "ln_b"))


def _ffn_params(params, prefix):
    return tuple(params[f"{prefix}_{n}"] for n in
                 ("w1", "b1", "w2", "b2", "ln_g", "ln_b"))


def chexagent_qformer_layer(hidden_states, attention_mask,
                            encoder_hidden_states, encoder_attention_mask,
                            params, *, num_heads, query_length,
                            has_cross_attention=True, eps=1e-12):
    """CheXagentQFormerLayer.forward (eval), query tokens only.

    hidden_states         : (B, T, H)    query-token hidden states
    attention_mask        : (B, 1, T)    additive self-attention mask
    encoder_hidden_states : (B, S, E)    image encoder features
    encoder_attention_mask: (B, 1, S)    additive cross-attention mask
    Weights are pre-transposed to (in, out); biases / LN params are (1, out).
    """
    B, T, H = hidden_states.shape
    if query_length != T:
        # TODO(synk): text-token branch (feed_forward_chunk beyond query_length)
        # uses self.intermediate / self.output which the reference module never
        # defines in __init__; only the query-token path is implemented.
        raise NotImplementedError("only query_length == seq_len is supported")

    attention_output = _attn_block(
        hidden_states, hidden_states, attention_mask,
        *_attn_params(params, "sa"), num_heads=num_heads, eps=eps)

    query_out = attention_output
    if has_cross_attention:
        query_out = _attn_block(
            query_out, encoder_hidden_states, encoder_attention_mask,
            *_attn_params(params, "ca"), num_heads=num_heads, eps=eps)

    layer_output = _ffn_block(query_out, *_ffn_params(params, "ffn"), eps=eps)
    return layer_output


# ----------------------------------------------------------------------------
# Pure-JAX reference (mirrors the torch module op-for-op)
# ----------------------------------------------------------------------------
def _ref_attn_block(hs, kv, mask, wq, bq, wk, bk, wv, bv, wo, bo, g, b,
                    num_heads, eps):
    B, T, H = hs.shape
    S = kv.shape[1]
    dh = H // num_heads
    q = hs @ wq + bq[0]
    k = kv @ wk + bk[0]
    v = kv @ wv + bv[0]
    qh = q.reshape(B, T, num_heads, dh).transpose(0, 2, 1, 3)
    kh = k.reshape(B, S, num_heads, dh).transpose(0, 2, 1, 3)
    vh = v.reshape(B, S, num_heads, dh).transpose(0, 2, 1, 3)
    s = jnp.einsum("bntd,bnsd->bnts", qh, kh) / math.sqrt(dh)
    s = s + mask[:, :, None, :]
    p = jax.nn.softmax(s, axis=-1)
    ctx = jnp.einsum("bnts,bnsd->bntd", p, vh)
    ctx = ctx.transpose(0, 2, 1, 3).reshape(B, T, H)
    y = ctx @ wo + bo[0] + hs
    mu = y.mean(-1, keepdims=True)
    var = ((y - mu) ** 2).mean(-1, keepdims=True)
    return (y - mu) / jnp.sqrt(var + eps) * g[0] + b[0]


def _ref_ffn_block(x, w1, b1, w2, b2, g, b, eps):
    h = jax.nn.gelu(x @ w1 + b1[0], approximate=False)
    y = h @ w2 + b2[0] + x
    mu = y.mean(-1, keepdims=True)
    var = ((y - mu) ** 2).mean(-1, keepdims=True)
    return (y - mu) / jnp.sqrt(var + eps) * g[0] + b[0]


def _reference_layer(hidden_states, attention_mask, encoder_hidden_states,
                     encoder_attention_mask, params, *, num_heads, eps,
                     has_cross_attention=True):
    att = _ref_attn_block(hidden_states, hidden_states, attention_mask,
                          *_attn_params(params, "sa"), num_heads, eps)
    q = att
    if has_cross_attention:
        q = _ref_attn_block(q, encoder_hidden_states, encoder_attention_mask,
                            *_attn_params(params, "ca"), num_heads, eps)
    return _ref_ffn_block(q, *_ffn_params(params, "ffn"), eps)


# ----------------------------------------------------------------------------
# Self-test
# ----------------------------------------------------------------------------
if __name__ == "__main__":
    # Small config consistent with the module: query-only QFormer layer with
    # cross-attention (layer_idx % cross_attention_frequency == 0).
    B, T, H, NH = 2, 8, 32, 4          # batch, query tokens, hidden, heads
    ENC_H, S_ENC = 48, 16              # encoder hidden size, encoder seq len
    INTER = 64                         # intermediate size
    EPS = 1e-12

    key = jax.random.PRNGKey(0)
    ks = jax.random.split(key, 10)

    def w(k, shape, scale=0.1):
        return scale * jax.random.normal(k, shape, jnp.float32)

    def init_attn(k, kv_dim):
        kk = jax.random.split(k, 10)
        return {
            "wq": w(kk[0], (H, H)),      "bq": w(kk[1], (1, H)),
            "wk": w(kk[2], (kv_dim, H)), "bk": w(kk[3], (1, H)),
            "wv": w(kk[4], (kv_dim, H)), "bv": w(kk[5], (1, H)),
            "wo": w(kk[6], (H, H)),      "bo": w(kk[7], (1, H)),
            "ln_g": 1.0 + w(kk[8], (1, H)),
            "ln_b": w(kk[9], (1, H)),
        }

    params = {}
    for prefix, kv_dim, kk in (("sa", H, ks[0]), ("ca", ENC_H, ks[1])):
        for name, val in init_attn(kk, kv_dim).items():
            params[f"{prefix}_{name}"] = val
    kf = jax.random.split(ks[2], 6)
    params.update({
        "ffn_w1": w(kf[0], (H, INTER)), "ffn_b1": w(kf[1], (1, INTER)),
        "ffn_w2": w(kf[2], (INTER, H)), "ffn_b2": w(kf[3], (1, H)),
        "ffn_ln_g": 1.0 + w(kf[4], (1, H)),
        "ffn_ln_b": w(kf[5], (1, H)),
    })

    hidden_states = jax.random.normal(ks[3], (B, T, H), jnp.float32)
    encoder_hidden_states = jax.random.normal(ks[4], (B, S_ENC, ENC_H),
                                              jnp.float32)
    # Additive masks (0 = attend, -1e4 = masked), HF extended-mask convention.
    self_mask = jnp.zeros((B, 1, T), jnp.float32)
    enc_mask = jnp.zeros((B, 1, S_ENC), jnp.float32)
    enc_mask = enc_mask.at[1, 0, S_ENC - 4:].set(-10000.0)

    out = chexagent_qformer_layer(
        hidden_states, self_mask, encoder_hidden_states, enc_mask, params,
        num_heads=NH, query_length=T, has_cross_attention=True, eps=EPS)
    out = jax.block_until_ready(out)

    ref = _reference_layer(
        hidden_states, self_mask, encoder_hidden_states, enc_mask, params,
        num_heads=NH, eps=EPS, has_cross_attention=True)

    assert out.shape == (B, T, H), out.shape
    max_err = float(jnp.max(jnp.abs(out - ref)))
    assert jnp.allclose(out, ref, atol=1e-3, rtol=1e-3), max_err
    print("KERNEL_OK")
</pallas_src>

<mosaic_0001>
module attributes {stable_mosaic.version = 11 : i64} {
  func.func @_attn_block_kernel(%arg0: i32, %arg1: memref<1x8x32xf32, #tpu.memory_space<vmem>>, %arg2: memref<1x8x32xf32, #tpu.memory_space<vmem>>, %arg3: memref<1x1x8xf32, #tpu.memory_space<vmem>>, %arg4: memref<32x32xf32, #tpu.memory_space<vmem>>, %arg5: memref<1x32xf32, #tpu.memory_space<vmem>>, %arg6: memref<32x32xf32, #tpu.memory_space<vmem>>, %arg7: memref<1x32xf32, #tpu.memory_space<vmem>>, %arg8: memref<32x32xf32, #tpu.memory_space<vmem>>, %arg9: memref<1x32xf32, #tpu.memory_space<vmem>>, %arg10: memref<32x32xf32, #tpu.memory_space<vmem>>, %arg11: memref<1x32xf32, #tpu.memory_space<vmem>>, %arg12: memref<1x32xf32, #tpu.memory_space<vmem>>, %arg13: memref<1x32xf32, #tpu.memory_space<vmem>>, %arg14: memref<1x8x32xf32, #tpu.memory_space<vmem>>) attributes {dimension_semantics = [#tpu.dimension_semantics<parallel>], iteration_bounds = array<i64: 2>, scalar_prefetch = 0 : i64, scratch_operands = 0 : i64, tpu.core_type = #tpu.core_type<tc>, window_params = [{transform_indices = @transform_0, window_bounds = array<i64: 1, 8, 32>}, {transform_indices = @transform_1, window_bounds = array<i64: 1, 8, 32>}, {transform_indices = @transform_2, window_bounds = array<i64: 1, 1, 8>}, {pipeline_mode = #tpu.pipeline_mode<synchronous>, transform_indices = @transform_3, window_bounds = array<i64: 32, 32>}, {pipeline_mode = #tpu.pipeline_mode<synchronous>, transform_indices = @transform_4, window_bounds = array<i64: 1, 32>}, {pipeline_mode = #tpu.pipeline_mode<synchronous>, transform_indices = @transform_5, window_bounds = array<i64: 32, 32>}, {pipeline_mode = #tpu.pipeline_mode<synchronous>, transform_indices = @transform_6, window_bounds = array<i64: 1, 32>}, {pipeline_mode = #tpu.pipeline_mode<synchronous>, transform_indices = @transform_7, window_bounds = array<i64: 32, 32>}, {pipeline_mode = #tpu.pipeline_mode<synchronous>, transform_indices = @transform_8, window_bounds = array<i64: 1, 32>}, {pipeline_mode = #tpu.pipeline_mode<synchronous>, transform_indices = @transform_9, window_bounds = array<i64: 32, 32>}, {pipeline_mode = #tpu.pipeline_mode<synchronous>, transform_indices = @transform_10, window_bounds = array<i64: 1, 32>}, {pipeline_mode = #tpu.pipeline_mode<synchronous>, transform_indices = @transform_11, window_bounds = array<i64: 1, 32>}, {pipeline_mode = #tpu.pipeline_mode<synchronous>, transform_indices = @transform_12, window_bounds = array<i64: 1, 32>}, {transform_indices = @transform_13, window_bounds = array<i64: 1, 8, 32>}]} {
    %c0 = arith.constant 0 : index
    %c0_0 = arith.constant 0 : index
    %c0_1 = arith.constant 0 : index
    %0 = vector.load %arg1[%c0, %c0_0, %c0_1] : memref<1x8x32xf32, #tpu.memory_space<vmem>>, vector<1x8x32xf32>
    %1 = vector.shape_cast %0 : vector<1x8x32xf32> to vector<8x32xf32>
    %c0_2 = arith.constant 0 : index
    %c0_3 = arith.constant 0 : index
    %c0_4 = arith.constant 0 : index
    %2 = vector.load %arg2[%c0_2, %c0_3, %c0_4] : memref<1x8x32xf32, #tpu.memory_space<vmem>>, vector<1x8x32xf32>
    %3 = vector.shape_cast %2 : vector<1x8x32xf32> to vector<8x32xf32>
    %c0_5 = arith.constant 0 : index
    %c0_6 = arith.constant 0 : index
    %c0_7 = arith.constant 0 : index
    %4 = vector.load %arg3[%c0_5, %c0_6, %c0_7] : memref<1x1x8xf32, #tpu.memory_space<vmem>>, vector<1x1x8xf32>
    %5 = vector.shape_cast %4 : vector<1x1x8xf32> to vector<1x8xf32>
    %c0_8 = arith.constant 0 : index
    %c0_9 = arith.constant 0 : index
    %6 = vector.load %arg4[%c0_8, %c0_9] : memref<32x32xf32, #tpu.memory_space<vmem>>, vector<32x32xf32>
    %cst = arith.constant dense<0.000000e+00> : vector<8x32xf32>
    %7 = tpu.matmul %1, %6, %cst {dimension_numbers = #tpu.dot_dimension_numbers<[1], [0], [0], [1], [0, 0, 1, 1], [], []>, precision = #tpu.contract_precision<fp32>} : vector<8x32xf32>, vector<32x32xf32>, vector<8x32xf32> -> vector<8x32xf32>
    %c0_10 = arith.constant 0 : index
    %c0_11 = arith.constant 0 : index
    %8 = vector.load %arg5[%c0_10, %c0_11] : memref<1x32xf32, #tpu.memory_space<vmem>>, vector<1x32xf32>
    %9 = vector.broadcast %8 : vector<1x32xf32> to vector<8x32xf32>
    %10 = arith.addf %7, %9 : vector<8x32xf32>
    %c0_12 = arith.constant 0 : index
    %c0_13 = arith.constant 0 : index
    %11 = vector.load %arg6[%c0_12, %c0_13] : memref<32x32xf32, #tpu.memory_space<vmem>>, vector<32x32xf32>
    %cst_14 = arith.constant dense<0.000000e+00> : vector<8x32xf32>
    %12 = tpu.matmul %3, %11, %cst_14 {dimension_numbers = #tpu.dot_dimension_numbers<[1], [0], [0], [1], [0, 0, 1, 1], [], []>, precision = #tpu.contract_precision<fp32>} : vector<8x32xf32>, vector<32x32xf32>, vector<8x32xf32> -> vector<8x32xf32>
    %c0_15 = arith.constant 0 : index
    %c0_16 = arith.constant 0 : index
    %13 = vector.load %arg7[%c0_15, %c0_16] : memref<1x32xf32, #tpu.memory_space<vmem>>, vector<1x32xf32>
    %14 = vector.broadcast %13 : vector<1x32xf32> to vector<8x32xf32>
    %15 = arith.addf %12, %14 : vector<8x32xf32>
    %c0_17 = arith.constant 0 : index
    %c0_18 = arith.constant 0 : index
    %16 = vector.load %arg8[%c0_17, %c0_18] : memref<32x32xf32, #tpu.memory_space<vmem>>, vector<32x32xf32>
    %cst_19 = arith.constant dense<0.000000e+00> : vector<8x32xf32>
    %17 = tpu.matmul %3, %16, %cst_19 {dimension_numbers = #tpu.dot_dimension_numbers<[1], [0], [0], [1], [0, 0, 1, 1], [], []>, precision = #tpu.contract_precision<fp32>} : vector<8x32xf32>, vector<32x32xf32>, vector<8x32xf32> -> vector<8x32xf32>
    %c0_20 = arith.constant 0 : index
    %c0_21 = arith.constant 0 : index
    %18 = vector.load %arg9[%c0_20, %c0_21] : memref<1x32xf32, #tpu.memory_space<vmem>>, vector<1x32xf32>
    %19 = vector.broadcast %18 : vector<1x32xf32> to vector<8x32xf32>
    %20 = arith.addf %17, %19 : vector<8x32xf32>
    %c0_22 = arith.constant 0 : index
    %c0_23 = arith.constant 0 : index
    %21 = vector.load %arg10[%c0_22, %c0_23] : memref<32x32xf32, #tpu.memory_space<vmem>>, vector<32x32xf32>
    %cst_24 = arith.constant 0.000000e+00 : f32
    %22 = vector.broadcast %cst_24 : f32 to vector<8x32xf32>
    %23 = vector.extract_strided_slice %10 {offsets = [0, 0], sizes = [8, 8], strides = [1, 1]} : vector<8x32xf32> to vector<8x8xf32>
    %24 = vector.extract_strided_slice %15 {offsets = [0, 0], sizes = [8, 8], strides = [1, 1]} : vector<8x32xf32> to vector<8x8xf32>
    %25 = vector.extract_strided_slice %20 {offsets = [0, 0], sizes = [8, 8], strides = [1, 1]} : vector<8x32xf32> to vector<8x8xf32>
    %cst_25 = arith.constant dense<0.000000e+00> : vector<8x8xf32>
    %26 = tpu.matmul %23, %24, %cst_25 {dimension_numbers = #tpu.dot_dimension_numbers<[1], [1], [0], [0], [0, 0, 1, 0], [], []>, precision = #tpu.contract_precision<fp32>} : vector<8x8xf32>, vector<8x8xf32>, vector<8x8xf32> -> vector<8x8xf32>
    %cst_26 = arith.constant 0.353553385 : f32
    %27 = vector.broadcast %cst_26 : f32 to vector<8x8xf32>
    %28 = arith.mulf %26, %27 : vector<8x8xf32>
    %29 = vector.broadcast %5 : vector<1x8xf32> to vector<8x8xf32>
    %30 = arith.addf %28, %29 : vector<8x8xf32>
    %cst_27 = arith.constant dense<0xFF800000> : vector<8xf32>
    %31 = vector.multi_reduction <maximumf>, %30, %cst_27 [1] : vector<8x8xf32> to vector<8xf32>
    %32 = vector.shape_cast %31 : vector<8xf32> to vector<8x1xf32>
    %33 = vector.broadcast %32 : vector<8x1xf32> to vector<8x8xf32>
    %34 = arith.subf %30, %33 : vector<8x8xf32>
    %35 = math.exp %34 : vector<8x8xf32>
    %cst_28 = arith.constant dense<0.000000e+00> : vector<8xf32>
    %36 = vector.multi_reduction <add>, %35, %cst_28 [1] : vector<8x8xf32> to vector<8xf32>
    %37 = vector.shape_cast %36 : vector<8xf32> to vector<8x1xf32>
    %38 = vector.broadcast %37 : vector<8x1xf32> to vector<8x8xf32>
    %39 = arith.divf %35, %38 : vector<8x8xf32>
    %cst_29 = arith.constant dense<0.000000e+00> : vector<8x8xf32>
    %40 = tpu.matmul %39, %25, %cst_29 {dimension_numbers = #tpu.dot_dimension_numbers<[1], [0], [0], [1], [0, 0, 1, 1], [], []>, precision = #tpu.contract_precision<fp32>} : vector<8x8xf32>, vector<8x8xf32>, vector<8x8xf32> -> vector<8x8xf32>
    %41 = vector.extract_strided_slice %21 {offsets = [0, 0], sizes = [8, 32], strides = [1, 1]} : vector<32x32xf32> to vector<8x32xf32>
    %cst_30 = arith.constant dense<0.000000e+00> : vector<8x32xf32>
    %42 = tpu.matmul %40, %41, %cst_30 {dimension_numbers = #tpu.dot_dimension_numbers<[1], [0], [0], [1], [0, 0, 1, 1], [], []>, precision = #tpu.contract_precision<fp32>} : vector<8x8xf32>, vector<8x32xf32>, vector<8x32xf32> -> vector<8x32xf32>
    %43 = arith.addf %22, %42 : vector<8x32xf32>
    %44 = vector.extract_strided_slice %10 {offsets = [0, 8], sizes = [8, 8], strides = [1, 1]} : vector<8x32xf32> to vector<8x8xf32>
    %45 = vector.extract_strided_slice %15 {offsets = [0, 8], sizes = [8, 8], strides = [1, 1]} : vector<8x32xf32> to vector<8x8xf32>
    %46 = vector.extract_strided_slice %20 {offsets = [0, 8], sizes = [8, 8], strides = [1, 1]} : vector<8x32xf32> to vector<8x8xf32>
    %cst_31 = arith.constant dense<0.000000e+00> : vector<8x8xf32>
    %47 = tpu.matmul %44, %45, %cst_31 {dimension_numbers = #tpu.dot_dimension_numbers<[1], [1], [0], [0], [0, 0, 1, 0], [], []>, precision = #tpu.contract_precision<fp32>} : vector<8x8xf32>, vector<8x8xf32>, vector<8x8xf32> -> vector<8x8xf32>
    %cst_32 = arith.constant 0.353553385 : f32
    %48 = vector.broadcast %cst_32 : f32 to vector<8x8xf32>
    %49 = arith.mulf %47, %48 : vector<8x8xf32>
    %50 = vector.broadcast %5 : vector<1x8xf32> to vector<8x8xf32>
    %51 = arith.addf %49, %50 : vector<8x8xf32>
    %cst_33 = arith.constant dense<0xFF800000> : vector<8xf32>
    %52 = vector.multi_reduction <maximumf>, %51, %cst_33 [1] : vector<8x8xf32> to vector<8xf32>
    %53 = vector.shape_cast %52 : vector<8xf32> to vector<8x1xf32>
    %54 = vector.broadcast %53 : vector<8x1xf32> to vector<8x8xf32>
    %55 = arith.subf %51, %54 : vector<8x8xf32>
    %56 = math.exp %55 : vector<8x8xf32>
    %cst_34 = arith.constant dense<0.000000e+00> : vector<8xf32>
    %57 = vector.multi_reduction <add>, %56, %cst_34 [1] : vector<8x8xf32> to vector<8xf32>
    %58 = vector.shape_cast %57 : vector<8xf32> to vector<8x1xf32>
    %59 = vector.broadcast %58 : vector<8x1xf32> to vector<8x8xf32>
    %60 = arith.divf %56, %59 : vector<8x8xf32>
    %cst_35 = arith.constant dense<0.000000e+00> : vector<8x8xf32>
    %61 = tpu.matmul %60, %46, %cst_35 {dimension_numbers = #tpu.dot_dimension_numbers<[1], [0], [0], [1], [0, 0, 1, 1], [], []>, precision = #tpu.contract_precision<fp32>} : vector<8x8xf32>, vector<8x8xf32>, vector<8x8xf32> -> vector<8x8xf32>
    %62 = vector.extract_strided_slice %21 {offsets = [8, 0], sizes = [8, 32], strides = [1, 1]} : vector<32x32xf32> to vector<8x32xf32>
    %cst_36 = arith.constant dense<0.000000e+00> : vector<8x32xf32>
    %63 = tpu.matmul %61, %62, %cst_36 {dimension_numbers = #tpu.dot_dimension_numbers<[1], [0], [0], [1], [0, 0, 1, 1], [], []>, precision = #tpu.contract_precision<fp32>} : vector<8x8xf32>, vector<8x32xf32>, vector<8x32xf32> -> vector<8x32xf32>
    %64 = arith.addf %43, %63 : vector<8x32xf32>
    %65 = vector.extract_strided_slice %10 {offsets = [0, 16], sizes = [8, 8], strides = [1, 1]} : vector<8x32xf32> to vector<8x8xf32>
    %66 = vector.extract_strided_slice %15 {offsets = [0, 16], sizes = [8, 8], strides = [1, 1]} : vector<8x32xf32> to vector<8x8xf32>
    %67 = vector.extract_strided_slice %20 {offsets = [0, 16], sizes = [8, 8], strides = [1, 1]} : vector<8x32xf32> to vector<8x8xf32>
    %cst_37 = arith.constant dense<0.000000e+00> : vector<8x8xf32>
    %68 = tpu.matmul %65, %66, %cst_37 {dimension_numbers = #tpu.dot_dimension_numbers<[1], [1], [0], [0], [0, 0, 1, 0], [], []>, precision = #tpu.contract_precision<fp32>} : vector<8x8xf32>, vector<8x8xf32>, vector<8x8xf32> -> vector<8x8xf32>
    %cst_38 = arith.constant 0.353553385 : f32
    %69 = vector.broadcast %cst_38 : f32 to vector<8x8xf32>
    %70 = arith.mulf %68, %69 : vector<8x8xf32>
    %71 = vector.broadcast %5 : vector<1x8xf32> to vector<8x8xf32>
    %72 = arith.addf %70, %71 : vector<8x8xf32>
    %cst_39 = arith.constant dense<0xFF800000> : vector<8xf32>
    %73 = vector.multi_reduction <maximumf>, %72, %cst_39 [1] : vector<8x8xf32> to vector<8xf32>
    %74 = vector.shape_cast %73 : vector<8xf32> to vector<8x1xf32>
    %75 = vector.broadcast %74 : vector<8x1xf32> to vector<8x8xf32>
    %76 = arith.subf %72, %75 : vector<8x8xf32>
    %77 = math.exp %76 : vector<8x8xf32>
    %cst_40 = arith.constant dense<0.000000e+00> : vector<8xf32>
    %78 = vector.multi_reduction <add>, %77, %cst_40 [1] : vector<8x8xf32> to vector<8xf32>
    %79 = vector.shape_cast %78 : vector<8xf32> to vector<8x1xf32>
    %80 = vector.broadcast %79 : vector<8x1xf32> to vector<8x8xf32>
    %81 = arith.divf %77, %80 : vector<8x8xf32>
    %cst_41 = arith.constant dense<0.000000e+00> : vector<8x8xf32>
    %82 = tpu.matmul %81, %67, %cst_41 {dimension_numbers = #tpu.dot_dimension_numbers<[1], [0], [0], [1], [0, 0, 1, 1], [], []>, precision = #tpu.contract_precision<fp32>} : vector<8x8xf32>, vector<8x8xf32>, vector<8x8xf32> -> vector<8x8xf32>
    %83 = vector.extract_strided_slice %21 {offsets = [16, 0], sizes = [8, 32], strides = [1, 1]} : vector<32x32xf32> to vector<8x32xf32>
    %cst_42 = arith.constant dense<0.000000e+00> : vector<8x32xf32>
    %84 = tpu.matmul %82, %83, %cst_42 {dimension_numbers = #tpu.dot_dimension_numbers<[1], [0], [0], [1], [0, 0, 1, 1], [], []>, precision = #tpu.contract_precision<fp32>} : vector<8x8xf32>, vector<8x32xf32>, vector<8x32xf32> -> vector<8x32xf32>
    %85 = arith.addf %64, %84 : vector<8x32xf32>
    %86 = vector.extract_strided_slice %10 {offsets = [0, 24], sizes = [8, 8], strides = [1, 1]} : vector<8x32xf32> to vector<8x8xf32>
    %87 = vector.extract_strided_slice %15 {offsets = [0, 24], sizes = [8, 8], strides = [1, 1]} : vector<8x32xf32> to vector<8x8xf32>
    %88 = vector.extract_strided_slice %20 {offsets = [0, 24], sizes = [8, 8], strides = [1, 1]} : vector<8x32xf32> to vector<8x8xf32>
    %cst_43 = arith.constant dense<0.000000e+00> : vector<8x8xf32>
    %89 = tpu.matmul %86, %87, %cst_43 {dimension_numbers = #tpu.dot_dimension_numbers<[1], [1], [0], [0], [0, 0, 1, 0], [], []>, precision = #tpu.contract_precision<fp32>} : vector<8x8xf32>, vector<8x8xf32>, vector<8x8xf32> -> vector<8x8xf32>
    %cst_44 = arith.constant 0.353553385 : f32
    %90 = vector.broadcast %cst_44 : f32 to vector<8x8xf32>
    %91 = arith.mulf %89, %90 : vector<8x8xf32>
    %92 = vector.broadcast %5 : vector<1x8xf32> to vector<8x8xf32>
    %93 = arith.addf %91, %92 : vector<8x8xf32>
    %cst_45 = arith.constant dense<0xFF800000> : vector<8xf32>
    %94 = vector.multi_reduction <maximumf>, %93, %cst_45 [1] : vector<8x8xf32> to vector<8xf32>
    %95 = vector.shape_cast %94 : vector<8xf32> to vector<8x1xf32>
    %96 = vector.broadcast %95 : vector<8x1xf32> to vector<8x8xf32>
    %97 = arith.subf %93, %96 : vector<8x8xf32>
    %98 = math.exp %97 : vector<8x8xf32>
    %cst_46 = arith.constant dense<0.000000e+00> : vector<8xf32>
    %99 = vector.multi_reduction <add>, %98, %cst_46 [1] : vector<8x8xf32> to vector<8xf32>
    %100 = vector.shape_cast %99 : vector<8xf32> to vector<8x1xf32>
    %101 = vector.broadcast %100 : vector<8x1xf32> to vector<8x8xf32>
    %102 = arith.divf %98, %101 : vector<8x8xf32>
    %cst_47 = arith.constant dense<0.000000e+00> : vector<8x8xf32>
    %103 = tpu.matmul %102, %88, %cst_47 {dimension_numbers = #tpu.dot_dimension_numbers<[1], [0], [0], [1], [0, 0, 1, 1], [], []>, precision = #tpu.contract_precision<fp32>} : vector<8x8xf32>, vector<8x8xf32>, vector<8x8xf32> -> vector<8x8xf32>
    %104 = vector.extract_strided_slice %21 {offsets = [24, 0], sizes = [8, 32], strides = [1, 1]} : vector<32x32xf32> to vector<8x32xf32>
    %cst_48 = arith.constant dense<0.000000e+00> : vector<8x32xf32>
    %105 = tpu.matmul %103, %104, %cst_48 {dimension_numbers = #tpu.dot_dimension_numbers<[1], [0], [0], [1], [0, 0, 1, 1], [], []>, precision = #tpu.contract_precision<fp32>} : vector<8x8xf32>, vector<8x32xf32>, vector<8x32xf32> -> vector<8x32xf32>
    %106 = arith.addf %85, %105 : vector<8x32xf32>
    %c0_49 = arith.constant 0 : index
    %c0_50 = arith.constant 0 : index
    %107 = vector.load %arg11[%c0_49, %c0_50] : memref<1x32xf32, #tpu.memory_space<vmem>>, vector<1x32xf32>
    %108 = vector.broadcast %107 : vector<1x32xf32> to vector<8x32xf32>
    %109 = arith.addf %106, %108 : vector<8x32xf32>
    %110 = arith.addf %109, %1 : vector<8x32xf32>
    %c0_51 = arith.constant 0 : index
    %c0_52 = arith.constant 0 : index
    %111 = vector.load %arg12[%c0_51, %c0_52] : memref<1x32xf32, #tpu.memory_space<vmem>>, vector<1x32xf32>
    %c0_53 = arith.constant 0 : index
    %c0_54 = arith.constant 0 : index
    %112 = vector.load %arg13[%c0_53, %c0_54] : memref<1x32xf32, #tpu.memory_space<vmem>>, vector<1x32xf32>
    %cst_55 = arith.constant dense<0.000000e+00> : vector<8xf32>
    %113 = vector.multi_reduction <add>, %110, %cst_55 [1] : vector<8x32xf32> to vector<8xf32>
    %114 = vector.shape_cast %113 : vector<8xf32> to vector<8x1xf32>
    %cst_56 = arith.constant 3.200000e+01 : f32
    %115 = vector.broadcast %cst_56 : f32 to vector<8x1xf32>
    %116 = arith.divf %114, %115 : vector<8x1xf32>
    %117 = vector.broadcast %116 : vector<8x1xf32> to vector<8x32xf32>
    %118 = arith.subf %110, %117 : vector<8x32xf32>
    %119 = arith.mulf %118, %118 : vector<8x32xf32>
    %cst_57 = arith.constant dense<0.000000e+00> : vector<8xf32>
    %120 = vector.multi_reduction <add>, %119, %cst_57 [1] : vector<8x32xf32> to vector<8xf32>
    %121 = vector.shape_cast %120 : vector<8xf32> to vector<8x1xf32>
    %cst_58 = arith.constant 3.200000e+01 : f32
    %122 = vector.broadcast %cst_58 : f32 to vector<8x1xf32>
    %123 = arith.divf %121, %122 : vector<8x1xf32>
    %cst_59 = arith.constant 9.99999996E-13 : f32
    %124 = vector.broadcast %cst_59 : f32 to vector<8x1xf32>
    %125 = arith.addf %123, %124 : vector<8x1xf32>
    %126 = math.rsqrt %125 : vector<8x1xf32>
    %127 = vector.broadcast %126 : vector<8x1xf32> to vector<8x32xf32>
    %128 = arith.mulf %118, %127 : vector<8x32xf32>
    %129 = vector.broadcast %111 : vector<1x32xf32> to vector<8x32xf32>
    %130 = arith.mulf %128, %129 : vector<8x32xf32>
    %131 = vector.broadcast %112 : vector<1x32xf32> to vector<8x32xf32>
    %132 = arith.addf %130, %131 : vector<8x32xf32>
    %c0_60 = arith.constant 0 : index
    %c0_61 = arith.constant 0 : index
    %c0_62 = arith.constant 0 : index
    %133 = vector.load %arg14[%c0_60, %c0_61, %c0_62] : memref<1x8x32xf32, #tpu.memory_space<vmem>>, vector<1x8x32xf32>
    %134 = vector.shape_cast %133 : vector<1x8x32xf32> to vector<8x32xf32>
    %135 = vector.shape_cast %132 : vector<8x32xf32> to vector<1x8x32xf32>
    tpu.vector_store %arg14[%c0_60, %c0_61, %c0_62], %135 {strides = array<i32>} : memref<1x8x32xf32, #tpu.memory_space<vmem>>, vector<1x8x32xf32>,
    return
  }
  func.func @transform_0(%arg0: i32) -> (i32, i32, i32) {
    %c0_i32 = arith.constant 0 : i32
    %c0_i32_0 = arith.constant 0 : i32
    %c0_i32_1 = arith.constant 0 : i32
    return %arg0, %c0_i32, %c0_i32_0 : i32, i32, i32
  }
  func.func @transform_1(%arg0: i32) -> (i32, i32, i32) {
    %c0_i32 = arith.constant 0 : i32
    %c0_i32_0 = arith.constant 0 : i32
    %c0_i32_1 = arith.constant 0 : i32
    return %arg0, %c0_i32, %c0_i32_0 : i32, i32, i32
  }
  func.func @transform_2(%arg0: i32) -> (i32, i32, i32) {
    %c0_i32 = arith.constant 0 : i32
    %c0_i32_0 = arith.constant 0 : i32
    %c0_i32_1 = arith.constant 0 : i32
    return %arg0, %c0_i32, %c0_i32_0 : i32, i32, i32
  }
  func.func @transform_3(%arg0: i32) -> (i32, i32) {
    %c0_i32 = arith.constant 0 : i32
    %c0_i32_0 = arith.constant 0 : i32
    %c0_i32_1 = arith.constant 0 : i32
    return %c0_i32, %c0_i32_0 : i32, i32
  }
  func.func @transform_4(%arg0: i32) -> (i32, i32) {
    %c0_i32 = arith.constant 0 : i32
    %c0_i32_0 = arith.constant 0 : i32
    %c0_i32_1 = arith.constant 0 : i32
    return %c0_i32, %c0_i32_0 : i32, i32
  }
  func.func @transform_5(%arg0: i32) -> (i32, i32) {
    %c0_i32 = arith.constant 0 : i32
    %c0_i32_0 = arith.constant 0 : i32
    %c0_i32_1 = arith.constant 0 : i32
    return %c0_i32, %c0_i32_0 : i32, i32
  }
  func.func @transform_6(%arg0: i32) -> (i32, i32) {
    %c0_i32 = arith.constant 0 : i32
    %c0_i32_0 = arith.constant 0 : i32
    %c0_i32_1 = arith.constant 0 : i32
    return %c0_i32, %c0_i32_0 : i32, i32
  }
  func.func @transform_7(%arg0: i32) -> (i32, i32) {
    %c0_i32 = arith.constant 0 : i32
    %c0_i32_0 = arith.constant 0 : i32
    %c0_i32_1 = arith.constant 0 : i32
    return %c0_i32, %c0_i32_0 : i32, i32
  }
  func.func @transform_8(%arg0: i32) -> (i32, i32) {
    %c0_i32 = arith.constant 0 : i32
    %c0_i32_0 = arith.constant 0 : i32
    %c0_i32_1 = arith.constant 0 : i32
    return %c0_i32, %c0_i32_0 : i32, i32
  }
  func.func @transform_9(%arg0: i32) -> (i32, i32) {
    %c0_i32 = arith.constant 0 : i32
    %c0_i32_0 = arith.constant 0 : i32
    %c0_i32_1 = arith.constant 0 : i32
    return %c0_i32, %c0_i32_0 : i32, i32
  }
  func.func @transform_10(%arg0: i32) -> (i32, i32) {
    %c0_i32 = arith.constant 0 : i32
    %c0_i32_0 = arith.constant 0 : i32
    %c0_i32_1 = arith.constant 0 : i32
    return %c0_i32, %c0_i32_0 : i32, i32
  }
  func.func @transform_11(%arg0: i32) -> (i32, i32) {
    %c0_i32 = arith.constant 0 : i32
    %c0_i32_0 = arith.constant 0 : i32
    %c0_i32_1 = arith.constant 0 : i32
    return %c0_i32, %c0_i32_0 : i32, i32
  }
  func.func @transform_12(%arg0: i32) -> (i32, i32) {
    %c0_i32 = arith.constant 0 : i32
    %c0_i32_0 = arith.constant 0 : i32
    %c0_i32_1 = arith.constant 0 : i32
    return %c0_i32, %c0_i32_0 : i32, i32
  }
  func.func @transform_13(%arg0: i32) -> (i32, i32, i32) {
    %c0_i32 = arith.constant 0 : i32
    %c0_i32_0 = arith.constant 0 : i32
    %c0_i32_1 = arith.constant 0 : i32
    return %arg0, %c0_i32, %c0_i32_0 : i32, i32, i32
  }
}

</mosaic_0001>

<bundles_post_ra>
// kernel: tpu_custom_call.1
= control target key start
LH: loop header
LB: loop body
LE: loop exit
PB: predicated region body
PF: predicated region fallthrough
CT: control target
= control target key end

     0   :  { %s10272_s0 = inlined_call_operand.hbm [shape: f32[2,8,32], index: 0, kind: input, shape index: {}]   ;;  %s10273_s1 = inlined_call_operand.hbm [shape: f32[2,8,32], index: 1, kind: input, shape index: {}]   ;;  %s10274_s2 = inlined_call_operand.vmem [shape: f32[2,1,8], index: 2, kind: input, shape index: {}]   ;;  %s10275_s3 = inlined_call_operand.hbm [shape: f32[32,32], index: 3, kind: input, shape index: {}]   ;;  %s10276_s4 = inlined_call_operand.hbm [shape: f32[1,32], index: 4, kind: input, shape index: {}]   ;;  %s10277_s5 = inlined_call_operand.hbm [shape: f32[32,32], index: 5, kind: input, shape index: {}]   ;;  %s10278_s6 = inlined_call_operand.hbm [shape: f32[1,32], index: 6, kind: input, shape index: {}]   ;;  %s10279_s7 = inlined_call_operand.hbm [shape: f32[32,32], index: 7, kind: input, shape index: {}]   ;;  %s10280_s8 = inlined_call_operand.hbm [shape: f32[1,32], index: 8, kind: input, shape index: {}]   ;;  %s10281_s9 = inlined_call_operand.vmem [shape: f32[32,32], index: 9, kind: input, shape index: {}]   ;;  %s10282_s10 = inlined_call_operand.vmem [shape: f32[1,32], index: 10, kind: input, shape index: {}]   ;;  %s10283_s11 = inlined_call_operand.vmem [shape: f32[1,32], index: 11, kind: input, shape index: {}]   ;;  %s10284_s12 = inlined_call_operand.vmem [shape: f32[1,32], index: 12, kind: input, shape index: {}]   ;;  %s10285_s13 = inlined_call_operand.hbm [shape: f32[2,8,32], index: 13, kind: output, shape index: {}]  }
   0x1   :  { %10294 = sst [smem:[#allocation24_spill]] %s10275_s3 }
   0x2   :  { %10295 = sst [smem:[#allocation25_spill]] %s10276_s4 }
   0x3   :  { %10296 = sst [smem:[#allocation26_spill]] %s10277_s5 }
   0x4   :  { %10297 = sst [smem:[#allocation27_spill]] %s10278_s6 }
   0x5   :  { %10298 = sst [smem:[#allocation28_spill]] %s10279_s7 }
   0x6   :  { %10299 = sst [smem:[#allocation29_spill]] %s10281_s9 }
   0x7   :  { %10300 = sst [smem:[#allocation30_spill]] %s10282_s10 }
   0x8   :  { %10301 = sst [smem:[#allocation31_spill]] %s10283_s11 }
   0x9   :  { %10302 = sst [smem:[#allocation32_spill]] %s10284_s12 }
   0xa   :  { %10303 = sst [smem:[#allocation33_spill]] %s10285_s13 }
   0xb   :  { %18 = vsyncpa [#allocation3], 0 }
   0xc   :  { %20 = vsyncpa [#allocation3 + $0x1], 0 }
   0xd   :  { %21 = vsyncpa [#allocation6], 0 }
   0xe   :  { %23 = vsyncpa [#allocation6 + $0x1], 0 }
   0xf   :  { %24 = vsyncpa [#allocation9], 0 }
  0x10   :  { %25 = vsyncpa [#allocation12], 0 }
  0x11   :  { %26 = vsyncpa [#allocation15], 0 }
  0x12   :  { %27 = vsyncpa [#allocation4], 0 }
  0x13   :  { %29 = vsyncpa [#allocation4 + $0x1], 0  ;;  %s9369_s25 = smov 0   ;;  %s9371_s26 = smov 0  }
  0x14   :  { %s9373_s27 = smov 0   ;;  %s9375_s28 = smov 0  }
  0x15 LB: > { %s9282_s29 = smov [#allocation7]   ;;  %s9390_s14 = sadd.s32 4294967295, %s9280_s28   ;;  %s9280_s28 = sphi %s9375_s28, %s10340_s28   ;;  %s9276_s27 = sphi %s9373_s27, %s10339_s27   ;;  %s9272_s26 = sphi %s9371_s26, %s10338_s26   ;;  %s9268_s25 = sphi %s9369_s25, %s10337_s25  }
  0x16   : > { %s366_s30 = sshll.u32 %s9282_s29, 4  ;;  %p7781_p0 = scmp.ge.s32.totalorder %s9280_s28, 1  ;;  %s9395_s30 = int_to_ptr.vmem [resolvable:$true] %s366_s30 }
  0x17   : > { %p10290_p1 = scmp.eq.s32.totalorder %s9390_s14, 0  ;;  %p354_p2 = scmp.lt.s32.totalorder %s9280_s28, 3 }
  0x18   : > { %s9283_s16 = smov [#allocation8]   ;;  %s9284_s19 = smov [#allocation11]  }
  0x19   : > { %p9397_p3 = pnand %p7781_p0, %p354_p2  ;;  %s380_s17 = sshll.u32 %s9283_s16, 4  ;;  %s9410_s17 = int_to_ptr.vmem [resolvable:$true] %s380_s17 }
  0x1a   : > { %s404_s20 = sshll.u32 %s9284_s19, 4  ;;  %s10306_s3 = sld [smem:[#allocation24_spill]]  ;;  %s9412_s20 = int_to_ptr.vmem [resolvable:$true] %s404_s20 }
  0x1b   : > { %s10304_s15 = scalar_select %p9397_p3, 1, 0 }
  0x1c   : > { %p8857_p5 = pneg %p9397_p3 }
  0x1e   : > { %p9406_p6 = pnand %p8857_p5, %p10290_p1 }
  0x20   : > { %s8966_s23 = scalar_lea.hbm %s10306_s3, 512  ;;  %p9422_p8 = pneg %p9406_p6 }
  0x21   : > { %p8967_p7 = scmp.ne.s32.totalorder %s10306_s3, %s8966_s23  ;;  %p8973_p11 = scmp.lt.u32.totalorder %s8966_s23, %s10306_s3 }
  0x23   : > { %p8969_p9 = pnand %p9422_p8, %p8967_p7 }
  0x25   : > { %p8970_p10 = pneg %p8969_p9 }
  0x27   : > { %p8975_p12 = pnand %p8973_p11, %p8970_p10 }
  0x29   : > { %8978 = shalt.err (!%p8975_p12)
}
  0x2a   : > { %s8979_s21 = scalar_lea.vmem %s9395_s30, 512  ;;  %p8987_p5 = scmp.lt.s32.totalorder %s9395_s30, %s9395_s30 }
  0x2b   : > { %p8980_p13 = scmp.ne.s32.totalorder %s9395_s30, %s8979_s21  ;;  %p8988_p4 = scmp.lt.s32.totalorder %s8979_s21, %s8979_s21 }
  0x2d   : > { %p8982_p0 = pnand %p8980_p13, %p9422_p8  ;;  %p8989_p7 = por %p8988_p4, %p8987_p5 }
  0x2f   : > { %p8983_p2 = pneg %p8982_p0 }
  0x31   : > { %p8990_p9 = pnand %p8989_p7, %p8983_p2 }
  0x33   : > { %8993 = shalt.err (!%p8990_p9)
}
  0x34   : > { %s10288_s22 = smov 128   ;;  %s9286_s13 = smov 8  }
  0x35   : > { %8860 = dma.hbm_to_vmem [thread:$0]  (!%p9406_p6), %s10306_s3, 512, %s9395_s30, [#allocation6], %s10288_s22, %s10288_s22, %s9286_s13  }
  0x36   : > { %s10308_s4 = sld [smem:[#allocation25_spill]] }
  0x3c   : > { %s8994_s21 = scalar_lea.hbm %s10308_s4, 16 }
  0x3d   : > { %p8995_p4 = scmp.ne.s32.totalorder %s10308_s4, %s8994_s21  ;;  %p9001_p12 = scmp.lt.u32.totalorder %s8994_s21, %s10308_s4 }
  0x3f   : > { %p8997_p10 = pnand %p8995_p4, %p9422_p8 }
  0x41   : > { %p8998_p11 = pneg %p8997_p10 }
  0x43   : > { %p9003_p13 = pnand %p9001_p12, %p8998_p11 }
  0x45   : > { %9006 = shalt.err (!%p9003_p13)
}
  0x46   : > { %s9007_s30 = scalar_lea.vmem %s9410_s17, 16  ;;  %s9014_s11 = scalar_lea.vmem %s9410_s17, 32 }
  0x47   : > { %p9008_p0 = scmp.ne.s32.totalorder %s9410_s17, %s9007_s30  ;;  %p9015_p7 = scmp.lt.s32.totalorder %s9410_s17, %s9410_s17 }
  0x48   : > { %p9016_p9 = scmp.lt.s32.totalorder %s9014_s11, %s9007_s30 }
  0x49   : > { %p9010_p2 = pnand %p9008_p0, %p9422_p8 }
  0x4a   : > { %p9017_p4 = por %p9016_p9, %p9015_p7 }
  0x4b   : > { %p9011_p5 = pneg %p9010_p2 }
  0x4d   : > { %p9018_p10 = pnand %p9017_p4, %p9011_p5 }
  0x4f   : > { %9021 = shalt.err (!%p9018_p10)
}
  0x50   : > { %8863 = dma.hbm_to_vmem [thread:$0]  (!%p9406_p6), %s10308_s4, 16, %s9410_s17, [#allocation9]  }
  0x51   : > { %s10309_s6 = sld [smem:[#allocation27_spill]] }
  0x57   : > { %s9022_s24 = scalar_lea.hbm %s10309_s6, 16 }
  0x58   : > { %p9023_p11 = scmp.ne.s32.totalorder %s10309_s6, %s9022_s24  ;;  %p9029_p0 = scmp.lt.u32.totalorder %s9022_s24, %s10309_s6 }
  0x5a   : > { %p9025_p12 = pnand %p9023_p11, %p9422_p8 }
  0x5c   : > { %p9026_p13 = pneg %p9025_p12 }
  0x5e   : > { %p9031_p2 = pnand %p9029_p0, %p9026_p13 }
  0x60   : > { %9034 = shalt.err (!%p9031_p2)
}
  0x61   : > { %s9035_s17 = scalar_lea.vmem %s9412_s20, 16  ;;  %s9042_s11 = scalar_lea.vmem %s9412_s20, 32 }
  0x62   : > { %p9036_p5 = scmp.ne.s32.totalorder %s9412_s20, %s9035_s17  ;;  %p9043_p4 = scmp.lt.s32.totalorder %s9412_s20, %s9412_s20 }
  0x63   : > { %p9044_p10 = scmp.lt.s32.totalorder %s9042_s11, %s9035_s17 }
  0x64   : > { %p9038_p7 = pnand %p9036_p5, %p9422_p8 }
  0x65   : > { %p9045_p11 = por %p9044_p10, %p9043_p4 }
  0x66   : > { %p9039_p9 = pneg %p9038_p7 }
  0x68   : > { %p9046_p12 = pnand %p9045_p11, %p9039_p9 }
  0x6a   : > { %9049 = shalt.err (!%p9046_p12)
}
  0x6b   : > { %8869 = dma.hbm_to_vmem [thread:$0]  (!%p9406_p6), %s10309_s6, 16, %s9412_s20, [#allocation12]  }
  0x6c   : > { %s9287_s12 = smov [#allocation10]   ;;  %s9288_s24 = smov [#allocation13]  }
  0x6d   : > { %s390_s23 = sshll.u32 %s9287_s12, 4  ;;  %s414_s29 = sshll.u32 %s9288_s24, 4  ;;  %s391_s23 = int_to_ptr.vmem [resolvable:$true] %s390_s23  ;;  %s415_s29 = int_to_ptr.vmem [resolvable:$true] %s414_s29 }
  0x6e   : > { %s10310_s5 = sld [smem:[#allocation26_spill]] }
  0x74   : > { %s9050_s30 = scalar_lea.hbm %s10310_s5, 512 }
  0x75   : > { %p9051_p13 = scmp.ne.s32.totalorder %s10310_s5, %s9050_s30  ;;  %p9057_p5 = scmp.lt.u32.totalorder %s9050_s30, %s10310_s5 }
  0x77   : > { %p9053_p0 = pnand %p9051_p13, %p9422_p8 }
  0x79   : > { %p9054_p2 = pneg %p9053_p0 }
  0x7b   : > { %p9059_p7 = pnand %p9057_p5, %p9054_p2 }
  0x7d   : > { %9062 = shalt.err (!%p9059_p7)
}
  0x7e   : > { %s9063_s20 = scalar_lea.vmem %s391_s23, 512  ;;  %p9071_p11 = scmp.lt.s32.totalorder %s391_s23, %s391_s23 }
  0x7f   : > { %p9064_p9 = scmp.ne.s32.totalorder %s391_s23, %s9063_s20  ;;  %p9072_p12 = scmp.lt.s32.totalorder %s9063_s20, %s9063_s20 }
  0x81   : > { %p9066_p4 = pnand %p9064_p9, %p9422_p8  ;;  %p9073_p1 = por %p9072_p12, %p9071_p11 }
  0x83   : > { %p9067_p10 = pneg %p9066_p4 }
  0x85   : > { %p9074_p3 = pnand %p9073_p1, %p9067_p10 }
  0x87   : > { %9077 = shalt.err (!%p9074_p3)
}
  0x88   : > { %s10311_s10 = smov 128   ;;  %s10312_s7 = sld [smem:[#allocation28_spill]] }
  0x89   : > { %8866 = dma.hbm_to_vmem [thread:$0]  (!%p9406_p6), %s10310_s5, 512, %s391_s23, [#allocation9], %s10311_s10, %s10311_s10, %s9286_s13  }
  0x8e   : > { %s9078_s21 = scalar_lea.hbm %s10312_s7, 512 }
  0x8f   : > { %p9079_p1 = scmp.ne.s32.totalorder %s10312_s7, %s9078_s21  ;;  %p9085_p0 = scmp.lt.u32.totalorder %s9078_s21, %s10312_s7 }
  0x91   : > { %p9081_p3 = pnand %p9079_p1, %p9422_p8 }
  0x93   : > { %p9082_p13 = pneg %p9081_p3 }
  0x95   : > { %p9087_p2 = pnand %p9085_p0, %p9082_p13 }
  0x97   : > { %9090 = shalt.err (!%p9087_p2)
}
  0x98   : > { %s9091_s20 = scalar_lea.vmem %s415_s29, 512  ;;  %p9099_p4 = scmp.lt.s32.totalorder %s415_s29, %s415_s29 }
  0x99   : > { %p9092_p5 = scmp.ne.s32.totalorder %s415_s29, %s9091_s20  ;;  %p9100_p10 = scmp.lt.s32.totalorder %s9091_s20, %s9091_s20 }
  0x9b   : > { %p9094_p7 = pnand %p9092_p5, %p9422_p8  ;;  %p9101_p11 = por %p9100_p10, %p9099_p4 }
  0x9d   : > { %p9095_p9 = pneg %p9094_p7 }
  0x9f   : > { %p9102_p12 = pnand %p9101_p11, %p9095_p9 }
  0xa1   : > { %9105 = shalt.err (!%p9102_p12)
}
  0xa2   : > { %8872 = dma.hbm_to_vmem [thread:$0]  (!%p9406_p6), %s10312_s7, 512, %s415_s29, [#allocation12], %s10311_s10, %s10311_s10, %s9286_s13  }
  0xa3   : > { %s9289_s12 = smov [#allocation14]   ;;  %s9106_s30 = scalar_lea.hbm %s10280_s8, 16 }
  0xa4   : > { %s428_s24 = sshll.u32 %s9289_s12, 4  ;;  %p9107_p1 = scmp.ne.s32.totalorder %s10280_s8, %s9106_s30  ;;  %s429_s24 = int_to_ptr.vmem [resolvable:$true] %s428_s24 }
  0xa5   : > { %p9113_p0 = scmp.lt.u32.totalorder %s9106_s30, %s10280_s8 }
  0xa6   : > { %p9109_p3 = pnand %p9107_p1, %p9422_p8 }
  0xa8   : > { %p9110_p13 = pneg %p9109_p3 }
  0xaa   : > { %p9115_p2 = pnand %p9113_p0, %p9110_p13 }
  0xac   : > { %9118 = shalt.err (!%p9115_p2)
}
  0xad   : > { %s9119_s13 = scalar_lea.vmem %s429_s24, 16  ;;  %s9126_s29 = scalar_lea.vmem %s429_s24, 32 }
  0xae   : > { %p9120_p5 = scmp.ne.s32.totalorder %s429_s24, %s9119_s13  ;;  %p9127_p4 = scmp.lt.s32.totalorder %s429_s24, %s429_s24 }
  0xaf   : > { %p9128_p10 = scmp.lt.s32.totalorder %s9126_s29, %s9119_s13 }
  0xb0   : > { %p9122_p7 = pnand %p9120_p5, %p9422_p8 }
  0xb1   : > { %p9129_p11 = por %p9128_p10, %p9127_p4 }
  0xb2   : > { %p9123_p9 = pneg %p9122_p7 }
  0xb4   : > { %p9130_p12 = pnand %p9129_p11, %p9123_p9 }
  0xb6   : > { %9133 = shalt.err (!%p9130_p12)
}
  0xb7   : > { %8875 = dma.hbm_to_vmem [thread:$0]  (!%p9406_p6), %s10280_s8, 16, %s429_s24, [#allocation15]  }
  0xb8   : > { %s7780_s16 = sadd.s32 4294967294, %s9280_s28   ;;  %s9556_s18 = sadd.s32 1, %s9280_s28  }
  0xb9   : > { %s39_s22 = ssub.s32 %s9280_s28, %s9556_s18  ;;  %s42_s12 = sadd.s32 1, %s9276_s27 }
  0xba   : > { %p40_p8 = scmp.eq.s32.totalorder %s39_s22, 0  ;;  %p49_p1 = scmp.ne.s32.totalorder %s9276_s27, %s9272_s26 }
  0xbb   : > { %p50_p3 = scmp.eq.s32.totalorder %s9280_s28, 0  ;;  %p55_p13 = scmp.ne.s32.totalorder %s9272_s26, %s9268_s25 }
  0xbc   : > { %s9567_s19 = scalar_select %p40_p8, %s9276_s27, %s42_s12  }
  0xbd   : > { %p9569_p0 = por %p50_p3, %p49_p1  ;;  %p10314_p2 = scmp.eq.s32.totalorder %s9390_s14, 0 }
  0xbe   : > { %p341_p5 = scmp.eq.s32.totalorder %s9390_s14, 1  ;;  %p347_p7 = scmp.eq.s32.totalorder %s7780_s16, 1 }
  0xbf   : > { %p9575_p6 = por %p10314_p2, %p55_p13  ;;  %p8893_p9 = scmp.lt.s32.totalorder %s9280_s28, 2 }
  0xc0   : > { %s451_s30 = sand.u32 1, %s9276_s27   ;;  %p9582_p4 = por %p341_p5, %p49_p1 }
  0xc1   : > { %s10315_s24 = scalar_select %p9575_p6, 1, 0 }
  0xc2   : > { %s10316_s17 = scalar_select %p9582_p4, 1, 0 }
  0xc3   : > { %p9586_p10 = por %p347_p7, %p55_p13  ;;  %s9590_s9 = sshll.u32 %s451_s30, 3 }
  0xc4   : > { %s7790_s20 = sshll.u32 %s9280_s28, 7  ;;  %s455_s23 = scalar_lea.vmem [#allocation2], %s9590_s9 }
  0xc5   : > { %s10317_s11 = scalar_select %p9586_p10, 1, 0 }
  0xc6   : > { %s9596_s10 = scalar_lea.hbm %s10272_s0, %s7790_s20  ;;  %s462_s16 = sshll.u32 %s455_s23, 4  ;;  %s9599_s16 = int_to_ptr.vmem [resolvable:$true] %s462_s16 }
  0xc7   : > { %p9603_p11 = pnand %p8893_p9, %p9569_p0  ;;  %s9610_s13 = scalar_lea.hbm %s10273_s1, %s7790_s20 }
  0xc8   : > { %s469_s29 = sand.u32 1, %s9280_s28   ;;  %s452_s4 = scalar_lea.sflag [#allocation3], %s451_s30 }
  0xc9   : > { %s9134_s5 = scalar_lea.hbm %s9596_s10, 128  ;;  %p9136_p8 = pneg %p9603_p11 }
  0xca   : > { %p9135_p12 = scmp.ne.s32.totalorder %s9596_s10, %s9134_s5  ;;  %s9139_s6 = scalar_lea.hbm %s10272_s0, 256 }
  0xcb   : > { %p9140_p13 = scmp.lt.u32.totalorder %s9596_s10, %s10272_s0  ;;  %p9141_p0 = scmp.lt.u32.totalorder %s9139_s6, %s9134_s5 }
  0xcc   : > { %p9137_p1 = pnand %p9136_p8, %p9135_p12  ;;  %p9143_p5 = scmp.lt.u32.totalorder %s9134_s5, %s9596_s10 }
  0xcd   : > { %p9142_p2 = por %p9141_p0, %p9140_p13 }
  0xce   : > { %p9138_p3 = pneg %p9137_p1 }
  0xcf   : > { %p9144_p7 = por %p9143_p5, %p9142_p2 }
  0xd1   : > { %p9145_p9 = pnand %p9144_p7, %p9138_p3 }
  0xd3   : > { %9148 = shalt.err (!%p9145_p9)
}
  0xd4   : > { %s9149_s30 = scalar_lea.vmem %s9599_s16, 128  ;;  %s9290_s20 = smov [#allocation2]  }
  0xd5   : > { %p9150_p12 = scmp.ne.s32.totalorder %s9599_s16, %s9149_s30  ;;  %s9154_s12 = sshll.u32 %s9290_s20, 4  ;;  %s9155_s12 = int_to_ptr.vmem [resolvable:$false] %s9154_s12 }
  0xd6   : > { %s9156_s7 = scalar_lea.vmem %s9155_s12, 256  ;;  %p9157_p4 = scmp.lt.s32.totalorder %s9599_s16, %s9155_s12 }
  0xd7   : > { %p9152_p1 = pnand %p9150_p12, %p9136_p8  ;;  %p9158_p13 = scmp.lt.s32.totalorder %s9156_s7, %s9149_s30 }
  0xd9   : > { %p9153_p10 = pneg %p9152_p1  ;;  %p9159_p0 = por %p9158_p13, %p9157_p4 }
  0xdb   : > { %p9160_p2 = pnand %p9159_p0, %p9153_p10 }
  0xdd   : > { %9163 = shalt.err (!%p9160_p2)
}
  0xde   : > { %8879 = dma.hbm_to_vmem [thread:$0]  (!%p9603_p11), %s9596_s10, 128, %s9599_s16, %s452_s4  }
  0xdf   : > { %s473_s5 = scalar_lea.vmem [#allocation5], %s9590_s9  ;;  %s470_s21 = scalar_lea.sflag [#allocation6], %s469_s29 }
  0xe0   : > { %s480_s6 = sshll.u32 %s473_s5, 4  ;;  %s9164_s23 = scalar_lea.hbm %s9610_s13, 128  ;;  %s481_s6 = int_to_ptr.vmem [resolvable:$true] %s480_s6 }
  0xe1   : > { %p9165_p4 = scmp.ne.s32.totalorder %s9610_s13, %s9164_s23  ;;  %s9169_s20 = scalar_lea.hbm %s10273_s1, 256 }
  0xe2   : > { %p9170_p5 = scmp.lt.u32.totalorder %s9610_s13, %s10273_s1  ;;  %p9171_p7 = scmp.lt.u32.totalorder %s9169_s20, %s9164_s23 }
  0xe3   : > { %p9167_p10 = pnand %p9165_p4, %p9136_p8  ;;  %p9173_p12 = scmp.lt.u32.totalorder %s9164_s23, %s9610_s13 }
  0xe4   : > { %p9172_p9 = por %p9171_p7, %p9170_p5 }
  0xe5   : > { %p9168_p3 = pneg %p9167_p10 }
  0xe6   : > { %p9174_p1 = por %p9173_p12, %p9172_p9 }
  0xe8   : > { %p9175_p13 = pnand %p9174_p1, %p9168_p3 }
  0xea   : > { %9178 = shalt.err (!%p9175_p13)
}
  0xeb   : > { %s9179_s4 = scalar_lea.vmem %s481_s6, 128  ;;  %s9291_s9 = smov [#allocation5]  }
  0xec   : > { %p9180_p0 = scmp.ne.s32.totalorder %s481_s6, %s9179_s4  ;;  %s9184_s10 = sshll.u32 %s9291_s9, 4  ;;  %s9185_s10 = int_to_ptr.vmem [resolvable:$false] %s9184_s10 }
  0xed   : > { %s9186_s16 = scalar_lea.vmem %s9185_s10, 256  ;;  %p9187_p10 = scmp.lt.s32.totalorder %s481_s6, %s9185_s10 }
  0xee   : > { %p9182_p2 = pnand %p9180_p0, %p9136_p8  ;;  %p9188_p6 = scmp.lt.s32.totalorder %s9186_s16, %s9179_s4 }
  0xf0   : > { %p9183_p4 = pneg %p9182_p2  ;;  %p9189_p5 = por %p9188_p6, %p9187_p10 }
  0xf2   : > { %p9190_p7 = pnand %p9189_p5, %p9183_p4 }
  0xf4   : > { %9193 = shalt.err (!%p9190_p7)
}
  0xf5   : > { %8882 = dma.hbm_to_vmem [thread:$0]  (!%p9603_p11), %s9610_s13, 128, %s481_s6, %s470_s21  }
  0xf6   : > { %p10319_p3 = scmp.ne.s32.totalorder %s10304_s15, 0 }
  0xf7   : > { %s9663_s29 = sand.u32 (!%p10319_p3), 1, %s9272_s26   ;;  %p10320_p6 = scmp.ne.s32.totalorder (!%p10319_p3), %s10315_s24, 0 }
  0xf8   : > { %495 = sbr.rel (%p10319_p3) target bundleno = 3800 (0xed8), region = 72  ;;  %s9666_s5 = sshll.u32 (!%p10319_p3), %s9663_s29, 3 }
  0xf9   : > { %s498_s23 = scalar_lea.sflag (!%p10319_p3), [#allocation3], %s9663_s29  ;;  %s501_s3 = scalar_lea.vmem (!%p10319_p3), [#allocation2], %s9666_s5 }
  0xff   : > { %9239 = dma.done.wait (%p10320_p6), %s498_s23, 128  }
 0x100   : > { %9241 = vsyncadd (%p10320_p6), %s498_s23, 4294967168  ;;  %s506_s15 = sand.u32 1, %s9390_s14   ;;  %s510_s13 = scalar_lea.vmem [#allocation5], %s9666_s5 }
 0x101   : > { %s507_s22 = scalar_lea.sflag [#allocation6], %s506_s15 }
 0x102   : > { %9243 = dma.done.wait (%p10320_p6), %s507_s22, 128  }
 0x103   : > { %9245 = vsyncadd (%p10320_p6), %s507_s22, 4294967168  ;;  %p10321_p11 = scmp.eq.s32.totalorder %s9390_s14, 0 }
 0x105   : > { %9247 = dma.done.wait (%p10321_p11), [#allocation6], 512   ;;  %p10322_p8 = pmov %p10321_p11 }
 0x107   : > { %9249 = vsyncadd (%p10322_p8), [#allocation6], 4294966784  ;;  %p10323_p9 = pmov %p10322_p8 }
 0x108   : > { %p10324_p12 = pmov %p10322_p8 }
 0x109   : > { %9251 = dma.done.wait (%p10323_p9), [#allocation9], 528  }
 0x10a   : > { %9253 = vsyncadd (%p10324_p12), [#allocation9], 4294966768  ;;  %p10325_p1 = pmov %p10322_p8 }
 0x10c   : > { %9255 = dma.done.wait (%p10325_p1), [#allocation12], 528   ;;  %p10326_p13 = pmov %p10325_p1 }
 0x10d   : > { %p10327_p0 = pmov %p10325_p1 }
 0x10e   : > { %9257 = vsyncadd (%p10326_p13), [#allocation12], 4294966768 }
 0x10f   : > { %9259 = dma.done.wait (%p10327_p0), [#allocation15], 16   ;;  %p10328_p2 = pmov %p10327_p0 }
 0x110   : > { %v9292_v0 = vmov 0.0|0.0   ;;  %vm9293_vm0 = vmmov 0   ;;  %v9294_v1 = vmov 0.0   ;;  %v591_v2 = vld [vmem:[#allocation7] sm:$0xff]  ;;  %v592_v3 = vld [vmem:[#allocation7 + $0x8] sm:$0xff]  ;;  %vm602_vm1 = vcmask 261120  }
 0x111   : > { %9261 = vsyncadd (%p10328_p2), [#allocation15], 4294967280  ;;  %8606 = vmatprep.subr.bf16.mxu0 %v9292_v0  ;;  %8642 = vmatprep.subr.bf16.mxu1 %v9292_v0  ;;  %v1091_v4 = vld [vmem:[#allocation10] sm:$0xff]  ;;  %v607_v5 = vand.u32 4294901760, %v591_v2  ;;  %v610_v6 = vand.u32 4294901760, %v592_v3  ;;  %v1092_v7 = vld [vmem:[#allocation10 + $0x8] sm:$0xff] }
 0x112   : > { %8056 = vmatprep.mubr.msk.f32.mxu0 %vm9293_vm0, %v9294_v1  ;;  %8122 = vmatprep.mubr.msk.f32.mxu1 %vm9293_vm0, %v9294_v1  ;;  %v1106_v8 = vand.u32 4294901760, %v1091_v4  ;;  %v593_v9 = vld [vmem:[#allocation7 + $0x10] sm:$0xff]  ;;  %v594_v10 = vld [vmem:[#allocation7 + $0x18] sm:$0xff]  ;;  %v1109_v11 = vand.u32 4294901760, %v1092_v7  ;;  %v588_v16 = vld [vmem:[%s501_s3] sm:$0xff]  ;;  %vm2090_vm2 = vcmask 64512  }
 0x113   : > { %v613_v12 = vand.u32 4294901760, %v593_v9  ;;  %v616_v13 = vand.u32 4294901760, %v594_v10  ;;  %v1093_v14 = vld [vmem:[#allocation10 + $0x10] sm:$0xff]  ;;  %v1094_v15 = vld [vmem:[#allocation10 + $0x18] sm:$0xff]  ;;  %v9704_v17 = vpack.c.bf16 %v610_v6, %v607_v5  ;;  %v9706_v18 = vsub.f32 %v591_v2, %v607_v5  ;;  %s9295_s24 = smov 120   ;;  %p585_p4 = scmp.lt.s32.totalorder %s9390_s14, 1 }
 0x114   : > { %v9708_v19 = vsub.f32 %v592_v3, %v610_v6  ;;  %v9710_v20 = vsub.f32 %v1091_v4, %v1106_v8  ;;  %v589_v21 = vld [vmem:[%s510_s13] sm:$0xff]  ;;  %v9714_v22 = vpack.c.bf16 %v1109_v11, %v1106_v8  ;;  %v9716_v23 = vsub.f32 %v1092_v7, %v1109_v11  ;;  %s9296_s12 = smov 112   ;;  %s10329_s9 = sld [smem:[#allocation29_spill]] }
 0x115   : > { %v9718_v24 = vpack.c.bf16 %v616_v13, %v613_v12  ;;  %v9720_v25 = vsub.f32 %v593_v9, %v613_v12  ;;  %8608 = vmatpush3.bf16.msra.mxu0 %v9704_v17  ;;  %v9723_v26 = vsub.f32 %v594_v10, %v616_v13  ;;  %v1112_v27 = vand.u32 4294901760, %v1093_v14  ;;  %s586_s6 = scalar_select %p585_p4, %s9390_s14, 1 }
 0x116   : > { %v1115_v28 = vand.u32 4294901760, %v1094_v15  ;;  %v604_v29 = vsel %vm602_vm1, %v588_v16, 0  ;;  %8644 = vmatpush3.bf16.msra.mxu1 %v9714_v22  ;;  %8609 = vmatprep.subr.bf16.mxu0 %v9292_v0  ;;  %v1103_v31 = vsel %vm602_vm1, %v589_v21, 0  ;;  %v688_v32 = vand.u32 4294901760, %v9706_v18  ;;  %s9297_s23 = smov 104   ;;  %s10330_s30 = sld [smem:[#allocation30_spill]] }
 0x117   : > { %v9728_v30 = vand.u32 4294901760, %v604_v29  ;;  %v695_v33 = vand.u32 4294901760, %v9708_v19  ;;  %8645 = vmatprep.subr.bf16.mxu1 %v9292_v0  ;;  %v9736_v35 = vsub.f32 %v1093_v14, %v1112_v27  ;;  %v9740_v37 = vand.u32 4294901760, %v1103_v31  ;;  %s587_s20 = scalar_lea.vmem %s10274_s2, %s586_s6  ;;  %s10332_s10 = sld [smem:[#allocation32_spill]] }
 0x118   : > { %v9734_v34 = vpack.c.bf16 %v1115_v28, %v1112_v27  ;;  %v9738_v36 = vsub.f32 %v1094_v15, %v1115_v28  ;;  %v689_v39 = vsub.f32 %v9706_v18, %v688_v32  ;;  %v1187_v41 = vand.u32 4294901760, %v9710_v20  ;;  %s7811_s16 = sshll.u32 %s9390_s14, 7  ;;  %s7608_s21 = scalar_lea.sflag [#allocation4], %s9663_s29 }
 0x119   : > { %v9743_v38 = vsub.f32 %v604_v29, %v9728_v30  ;;  %v696_v40 = vsub.f32 %v9708_v19, %v695_v33  ;;  %8611 = vmatpush3.bf16.msra.mxu0 %v9718_v24  ;;  %v9754_v42 = vsub.f32 %v1103_v31, %v9740_v37  ;;  %v1194_v43 = vand.u32 4294901760, %v9716_v23  ;;  %p10334_p5 = scmp.ne.s32.totalorder %s10316_s17, 0  ;;  %s9298_s14 = smov [#allocation16]  }
 0x11a   : > { %v702_v44 = vand.u32 4294901760, %v9720_v25  ;;  %v709_v45 = vand.u32 4294901760, %v9723_v26  ;;  %8647 = vmatpush3.bf16.msra.mxu1 %v9734_v34  ;;  %8612 = vmatprep.subr.bf16.mxu0 %v9292_v0  ;;  %v690_v47 = vand.u32 4294901760, %v689_v39  ;;  %v1188_v49 = vsub.f32 %v9710_v20, %v1187_v41 }
 0x11b   : > { %v677_v46 = vand.u32 4294901760, %v9743_v38  ;;  %v697_v48 = vand.u32 4294901760, %v696_v40  ;;  %v9766_v50 = vand.u32 4294901760, %v9754_v42  ;;  %8648 = vmatprep.subr.bf16.mxu1 %v9292_v0  ;;  %v1195_v51 = vsub.f32 %v9716_v23, %v1194_v43 }
 0x11c   : > { %v703_v52 = vsub.f32 %v9720_v25, %v702_v44  ;;  %v710_v53 = vsub.f32 %v9723_v26, %v709_v45  ;;  %v1189_v56 = vand.u32 4294901760, %v1188_v49  ;;  %v1201_v57 = vand.u32 4294901760, %v9736_v35 }
 0x11d   : > { %v678_v54 = vsub.f32 %v9743_v38, %v677_v46  ;;  %v8613_v55 = vpack.c.bf16 %v697_v48, %v690_v47  ;;  %v1177_v58 = vsub.f32 %v9754_v42, %v9766_v50  ;;  %v1196_v59 = vand.u32 4294901760, %v1195_v51 }
 0x11e   : > { %v704_v60 = vand.u32 4294901760, %v703_v52  ;;  %v711_v61 = vand.u32 4294901760, %v710_v53  ;;  %v1202_v63 = vsub.f32 %v9736_v35, %v1201_v57  ;;  %v1208_v2 = vand.u32 4294901760, %v9738_v36 }
 0x11f   : > { %v679_v62 = vand.u32 4294901760, %v678_v54  ;;  %v9788_v3 = vand.u32 4294901760, %v1177_v58  ;;  %v8649_v4 = vpack.c.bf16 %v1196_v59, %v1189_v56  ;;  %v8619_v10 = vpack.c.bf16 %v9708_v19, %v9706_v18  ;;  %v1591_v19 = vld [vmem:[#allocation13 + $0x8] sm:$0xff] }
 0x120   : > { %v1203_v5 = vand.u32 4294901760, %v1202_v63  ;;  %v1209_v6 = vsub.f32 %v9738_v36, %v1208_v2  ;;  %v8616_v7 = vpack.c.bf16 %v711_v61, %v704_v60  ;;  %v8655_v11 = vpack.c.bf16 %v9716_v23, %v9710_v20 }
 0x121   : > { %8057 = vmatmul.mubr.f32.vlgmr.msra.gmra.mrb[0].mxu0 %v679_v62  ;;  %8123 = vmatmul.mubr.f32.vlgmr.msra.gmra.mrb[0].mxu1 %v9788_v3  ;;  %v8622_v12 = vpack.c.bf16 %v9723_v26, %v9720_v25  ;;  %v8658_v13 = vpack.c.bf16 %v9738_v36, %v9736_v35  ;;  %v8631_v14 = vpack.c.bf16 %v695_v33, %v688_v32  ;;  %v1605_v21 = vand.u32 4294901760, %v1591_v19  ;;  %v1592_v25 = vld [vmem:[#allocation13 + $0x10] sm:$0xff]  ;;  %v1593_v26 = vld [vmem:[#allocation13 + $0x18] sm:$0xff] }
 0x122   : > { %8614 = vmatpush3.bf16.msra.mxu0 %v8613_v55  ;;  %8650 = vmatpush3.bf16.msra.mxu1 %v8649_v4  ;;  %v1210_v8 = vand.u32 4294901760, %v1209_v6  ;;  %v8667_v15 = vpack.c.bf16 %v1194_v43, %v1187_v41  ;;  %v8634_v16 = vpack.c.bf16 %v709_v45, %v702_v44  ;;  %v8670_v18 = vpack.c.bf16 %v1208_v2, %v1201_v57 }
 0x123   : > { %8615 = vmatprep.subr.bf16.mxu0 %v9292_v0  ;;  %8651 = vmatprep.subr.bf16.mxu1 %v9292_v0  ;;  %v1608_v27 = vand.u32 4294901760, %v1592_v25  ;;  %v1611_v28 = vand.u32 4294901760, %v1593_v26 }
 0x124   : > { %8067 = vmatprep.mubr.msk.f32.mxu0 %vm9293_vm0, %v9294_v1  ;;  %v8652_v9 = vpack.c.bf16 %v1210_v8, %v1203_v5  ;;  %8133 = vmatprep.mubr.msk.f32.mxu1 %vm9293_vm0, %v9294_v1 }
 0x125   : > { %v8682_v31 = vpack.c.bf16 %v1611_v28, %v1608_v27  ;;  %v1696_v32 = vsub.f32 %v1592_v25, %v1608_v27  ;;  %v1703_v33 = vsub.f32 %v1593_v26, %v1611_v28  ;;  %v9969_v27 = vld [vmem:[%s587_s20] ss:$0 sm:$0xff] }
 0x126   : > { %8617 = vmatpush3.bf16.msra.mxu0 %v8616_v7  ;;  %8653 = vmatpush3.bf16.msra.mxu1 %v8652_v9 }
 0x127   : > { %8618 = vmatprep.subr.bf16.mxu0 %v9292_v0  ;;  %8654 = vmatprep.subr.bf16.mxu1 %v9292_v0  ;;  %v1704_v39 = vand.u32 4294901760, %v1703_v33  ;;  %v8694_v49 = vpack.c.bf16 %v1703_v33, %v1696_v32 }
 0x129   : > { %8068 = vmatmul.mubr.f32.vlgmr.msra.gmra.mrb[0].mxu0 %v9728_v30  ;;  %8134 = vmatmul.mubr.f32.vlgmr.msra.gmra.mrb[0].mxu1 %v9740_v37  ;;  %v1705_v43 = vsub.f32 %v1703_v33, %v1704_v39 }
 0x12a   : > { %8620 = vmatpush3.bf16.msra.mxu0 %v8619_v10  ;;  %8656 = vmatpush3.bf16.msra.mxu1 %v8655_v11 }
 0x12b   : > { %8621 = vmatprep.subr.bf16.mxu0 %v9292_v0  ;;  %8657 = vmatprep.subr.bf16.mxu1 %v9292_v0 }
 0x12c   : > { %8078 = vmatprep.mubr.msk.f32.mxu0 %vm9293_vm0, %v9294_v1  ;;  %8144 = vmatprep.mubr.msk.f32.mxu1 %vm9293_vm0, %v9294_v1 }
 0x12e   : > { %8623 = vmatpush3.bf16.msra.mxu0 %v8622_v12  ;;  %8659 = vmatpush3.bf16.msra.mxu1 %v8658_v13 }
 0x12f   : > { %8624 = vmatprep.subr.bf16.mxu0 %v9292_v0  ;;  %8660 = vmatprep.subr.bf16.mxu1 %v9292_v0 }
 0x131   : > { %8079 = vmatmul.mubr.f32.vlgmr.msra.gmra.mrb[0].mxu0 %v9743_v38  ;;  %8145 = vmatmul.mubr.f32.vlgmr.msra.gmra.mrb[0].mxu1 %v9754_v42  ;;  %v1697_v38 = vand.u32 4294901760, %v1696_v32 }
 0x132   : > { %8626 = vmatpush3.bf16.msra.mxu0 %v9704_v17  ;;  %8662 = vmatpush3.bf16.msra.mxu1 %v9714_v22 }
 0x133   : > { %8627 = vmatprep.subr.bf16.mxu0 %v9292_v0  ;;  %8663 = vmatprep.subr.bf16.mxu1 %v9292_v0  ;;  %v1698_v41 = vsub.f32 %v1696_v32, %v1697_v38  ;;  %v8706_v52 = vpack.c.bf16 %v1704_v39, %v1697_v38 }
 0x134   : > { %8089 = vmatprep.mubr.msk.f32.mxu0 %vm9293_vm0, %v9294_v1  ;;  %8155 = vmatprep.mubr.msk.f32.mxu1 %vm9293_vm0, %v9294_v1 }
 0x135   : > { %v1699_v45 = vand.u32 4294901760, %v1698_v41 }
 0x136   : > { %8629 = vmatpush3.bf16.msra.mxu0 %v9718_v24  ;;  %8665 = vmatpush3.bf16.msra.mxu1 %v9734_v34 }
 0x137   : > { %8630 = vmatprep.subr.bf16.mxu0 %v9292_v0  ;;  %8666 = vmatprep.subr.bf16.mxu1 %v9292_v0 }
 0x139   : > { %8090 = vmatmul.mubr.f32.vlgmr.msra.gmra.mrb[0].mxu0 %v677_v46  ;;  %8156 = vmatmul.mubr.f32.vlgmr.msra.gmra.mrb[0].mxu1 %v9766_v50  ;;  %v1706_v46 = vand.u32 4294901760, %v1705_v43 }
 0x13a   : > { %8632 = vmatpush3.bf16.msra.mxu0 %v8631_v14  ;;  %8668 = vmatpush3.bf16.msra.mxu1 %v8667_v15 }
 0x13b   : > { %8633 = vmatprep.subr.bf16.mxu0 %v9292_v0  ;;  %8669 = vmatprep.subr.bf16.mxu1 %v9292_v0  ;;  %v8688_v47 = vpack.c.bf16 %v1706_v46, %v1699_v45 }
 0x13c   : > { %8100 = vmatprep.mubr.msk.f32.mxu0 %vm9293_vm0, %v9294_v1  ;;  %8166 = vmatprep.mubr.msk.f32.mxu1 %vm9293_vm0, %v9294_v1 }
 0x13e   : > { %8635 = vmatpush3.bf16.msra.mxu0 %v8634_v16  ;;  %8671 = vmatpush3.bf16.msra.mxu1 %v8670_v18 }
 0x13f   : > { %8636 = vmatprep.subr.bf16.mxu0 %v9292_v0  ;;  %8672 = vmatprep.subr.bf16.mxu1 %v9292_v0 }
 0x141   : > { %8101 = vmatmul.mubr.f32.vlgmr.msra.gmra.mrb[0].mxu0 %v9728_v30  ;;  %8167 = vmatmul.mubr.f32.vlgmr.msra.gmra.mrb[0].mxu1 %v9740_v37 }
 0x142   : > { %8638 = vmatpush3.bf16.msra.mxu0 %v9704_v17  ;;  %8674 = vmatpush3.bf16.msra.mxu1 %v9714_v22  ;;  %v1590_v17 = vld [vmem:[#allocation13] sm:$0xff] }
 0x143   : > { %8639 = vmatprep.subr.bf16.mxu0 %v9292_v0  ;;  %8675 = vmatprep.subr.bf16.mxu1 %v9292_v0  ;;  %v1602_v20 = vand.u32 4294901760, %v1590_v17 }
 0x144   : > { %8111 = vmatprep.mubr.msk.f32.mxu0 %vm9293_vm0, %v9294_v1  ;;  %8177 = vmatprep.mubr.msk.f32.mxu1 %vm9293_vm0, %v9294_v1 }
 0x145   : > { %v8679_v22 = vpack.c.bf16 %v1605_v21, %v1602_v20  ;;  %v1682_v23 = vsub.f32 %v1590_v17, %v1602_v20 }
 0x146   : > { %8641 = vmatpush3.bf16.msra.mxu0 %v9718_v24  ;;  %8677 = vmatpush3.bf16.msra.mxu1 %v9734_v34  ;;  %v1689_v24 = vsub.f32 %v1591_v19, %v1605_v21  ;;  %v7805_v21 = vld [vmem:[#allocation14] ss:$0 sm:$0xff] }
 0x147   : > { %8678 = vmatprep.subr.bf16.mxu0 %v9292_v0  ;;  %8246 = vmatprep.subr.mxu1 %v9294_v1  ;;  %v1683_v29 = vand.u32 4294901760, %v1682_v23 }
 0x148   : > { %v8691_v48 = vpack.c.bf16 %v1689_v24, %v1682_v23 }
 0x149   : > { %8112 = vmatmul.mubr.f32.vlgmr.msra.gmra.mrb[0].mxu0 %v9728_v30  ;;  %8178 = vmatmul.mubr.f32.vlgmr.msra.gmra.mrb[0].mxu1 %v9740_v37  ;;  %v1690_v30 = vand.u32 4294901760, %v1689_v24  ;;  %v1684_v34 = vsub.f32 %v1682_v23, %v1683_v29 }
 0x14a   : > { %8188 = vmatprep.mubr.msk.f32.mxu0 %vm9293_vm0, %v9294_v1  ;;  %8248 = vmatprep.mubr.msk.f32.mxu1 %vm9293_vm0, %v9294_v1 }
 0x14b   : > { %8680 = vmatpush3.bf16.msra.mxu0 %v8679_v22  ;;  %v1691_v35 = vsub.f32 %v1689_v24, %v1690_v30  ;;  %v1685_v36 = vand.u32 4294901760, %v1684_v34  ;;  %v8703_v51 = vpack.c.bf16 %v1690_v30, %v1683_v29 }
 0x14c   : > { %8681 = vmatprep.subr.bf16.mxu0 %v9292_v0 }
 0x14d   : > { %v1692_v40 = vand.u32 4294901760, %v1691_v35 }
 0x14f   : > { %8683 = vmatpush3.bf16.msra.mxu0 %v8682_v31  ;;  %v8685_v44 = vpack.c.bf16 %v1692_v40, %v1685_v36 }
 0x150   : > { %8684 = vmatprep.subr.bf16.mxu0 %v9292_v0 }
 0x152   : > { %8189 = vmatmul.mubr.f32.vlgmr.msra.gmra.mrb[2].mxu0 %v9788_v3 }
 0x153   : > { %8199 = vmatprep.mubr.msk.f32.mxu0 %vm9293_vm0, %v9294_v1  ;;  %8686 = vmatpush3.bf16.msra.mxu0 %v8685_v44 }
 0x154   : > { %8687 = vmatprep.subr.bf16.mxu0 %v9292_v0 }
 0x157   : > { %8689 = vmatpush3.bf16.msra.mxu0 %v8688_v47 }
 0x158   : > { %8690 = vmatprep.subr.bf16.mxu0 %v9292_v0 }
 0x15a   : > { %8200 = vmatmul.mubr.f32.vlgmr.msra.gmra.mrb[2].mxu0 %v9740_v37 }
 0x15b   : > { %8692 = vmatpush3.bf16.msra.mxu0 %v8691_v48  ;;  %8210 = vmatprep.mubr.msk.f32.mxu0 %vm9293_vm0, %v9294_v1 }
 0x15c   : > { %8693 = vmatprep.subr.bf16.mxu0 %v9292_v0 }
 0x15f   : > { %8695 = vmatpush3.bf16.msra.mxu0 %v8694_v49 }
 0x160   : > { %8696 = vmatprep.subr.bf16.mxu0 %v9292_v0 }
 0x162   : > { %8211 = vmatmul.mubr.f32.vlgmr.msra.gmra.mrb[2].mxu0 %v9754_v42  ;;  %v7803_v42 = vld [vmem:[#allocation8] ss:$0 sm:$0xff] }
 0x163   : > { %8698 = vmatpush3.bf16.msra.mxu0 %v8679_v22  ;;  %8221 = vmatprep.mubr.msk.f32.mxu0 %vm9293_vm0, %v9294_v1 }
 0x164   : > { %8699 = vmatprep.subr.bf16.mxu0 %v9292_v0 }
 0x167   : > { %8701 = vmatpush3.bf16.msra.mxu0 %v8682_v31 }
 0x168   : > { %8702 = vmatprep.subr.bf16.mxu0 %v9292_v0 }
 0x16a   : > { %8222 = vmatmul.mubr.f32.vlgmr.msra.gmra.mrb[2].mxu0 %v9766_v50  ;;  %v7804_v50 = vld [vmem:[#allocation11] ss:$0 sm:$0xff] }
 0x16b   : > { %8704 = vmatpush3.bf16.msra.mxu0 %v8703_v51  ;;  %8232 = vmatprep.mubr.msk.f32.mxu0 %vm9293_vm0, %v9294_v1 }
 0x16c   : > { %8705 = vmatprep.subr.bf16.mxu0 %v9292_v0 }
 0x16f   : > { %8707 = vmatpush3.bf16.msra.mxu0 %v8706_v52 }
 0x170   : > { %8708 = vmatprep.subr.bf16.mxu0 %v9292_v0 }
 0x172   : > { %8233 = vmatmul.mubr.f32.vlgmr.msra.gmra.mrb[2].mxu0 %v9740_v37 }
 0x173   : > { %8710 = vmatpush3.bf16.msra.mxu0 %v8679_v22  ;;  %8243 = vmatprep.mubr.msk.f32.mxu0 %vm9293_vm0, %v9294_v1 }
 0x174   : > { %8711 = vmatprep.subr.bf16.mxu0 %v9292_v0 }
 0x177   : > { %8713 = vmatpush3.bf16.msra.mxu0 %v8682_v31 }
 0x178   : > { %8306 = vmatprep.subr.mxu0 %v9294_v1 }
 0x17a   : > { %8244 = vmatmul.mubr.f32.vlgmr.msra.gmra.mrb[2].mxu0 %v9740_v37 }
 0x17b   : > { %8308 = vmatprep.mubr.msk.f32.mxu0 %vm9293_vm0, %v9294_v1 }
 0x21c   : > { %v1087_v53 = vpop.f32.mrb[0].mxu0  ;;  %v1586_v55 = vpop.f32.mrb[0].mxu1 }
 0x21d   : > { %v9907_v54 = vadd.f32 %v7803_v42, %v1087_v53  ;;  %v8113_v56 = vpop.f32.mrb[1].mxu0  ;;  %v9909_v57 = vadd.f32 %v7804_v50, %v1586_v55  ;;  %v8179_v58 = vpop.f32.mrb[1].mxu1 }
 0x21f   : > { %v2092_v0 = vsel %vm2090_vm2, %v9907_v54, 0  ;;  %3011 = vrot.lane.b32.xlu0 %v9907_v54, %s9295_s24  ;;  %v2095_v59 = vsel %vm2090_vm2, %v9909_v57, 0 }
 0x220   : > { %v2163_v37 = vand.u32 4294901760, %v2092_v0  ;;  %v2098_v60 = vand.u32 4294901760, %v2095_v59 }
 0x222   : > { %v2164_v61 = vsub.f32 %v2092_v0, %v2163_v37  ;;  %8247 = vmatpush3.xpose.msra.mxu1 %v2098_v60  ;;  %v2175_v62 = vsub.f32 %v2095_v59, %v2098_v60 }
 0x223   : > { %3013 = vrot.lane.b32.xlu0 %v9909_v57, %s9295_s24  ;;  %8251 = vmatprep.subr.mxu1 %v9294_v1 }
 0x224   : > { %v2165_v63 = vand.u32 4294901760, %v2164_v61  ;;  %v2176_v2 = vand.u32 4294901760, %v2175_v62 }
 0x226   : > { %v2166_v3 = vsub.f32 %v2164_v61, %v2165_v63  ;;  %v2177_v4 = vsub.f32 %v2175_v62, %v2176_v2 }
 0x228   : > { %v2167_v5 = vand.u32 4294901760, %v2166_v3  ;;  %v2178_v6 = vand.u32 4294901760, %v2177_v4 }
 0x22a   : > { %8249 = vmatmul.mubr.f32.vlgmr.msra.gmra.mrb[2].mxu1 %v2167_v5 }
 0x22b   : > { %8252 = vmatpush3.xpose.msra.mxu1 %v2178_v6  ;;  %8253 = vmatprep.mubr.msk.f32.mxu1 %vm9293_vm0, %v9294_v1 }
 0x22c   : > { %8256 = vmatprep.subr.mxu1 %v9294_v1 }
 0x232   : > { %8254 = vmatmul.mubr.f32.vlgmr.msra.gmra.mrb[2].mxu1 %v2163_v37 }
 0x233   : > { %8257 = vmatpush3.xpose.msra.mxu1 %v2175_v62  ;;  %8258 = vmatprep.mubr.msk.f32.mxu1 %vm9293_vm0, %v9294_v1 }
 0x234   : > { %8261 = vmatprep.subr.mxu1 %v9294_v1 }
 0x23a   : > { %8259 = vmatmul.mubr.f32.vlgmr.msra.gmra.mrb[2].mxu1 %v2164_v61 }
 0x23b   : > { %8262 = vmatpush3.xpose.msra.mxu1 %v2098_v60  ;;  %8263 = vmatprep.mubr.msk.f32.mxu1 %vm9293_vm0, %v9294_v1 }
 0x23c   : > { %8266 = vmatprep.subr.mxu1 %v9294_v1 }
 0x242   : > { %8264 = vmatmul.mubr.f32.vlgmr.msra.gmra.mrb[2].mxu1 %v2165_v63 }
 0x243   : > { %8267 = vmatpush3.xpose.msra.mxu1 %v2176_v2  ;;  %8268 = vmatprep.mubr.msk.f32.mxu1 %vm9293_vm0, %v9294_v1 }
 0x244   : > { %8271 = vmatprep.subr.mxu1 %v9294_v1 }
 0x24a   : > { %8269 = vmatmul.mubr.f32.vlgmr.msra.gmra.mrb[2].mxu1 %v2163_v37 }
 0x24b   : > { %8272 = vmatpush3.xpose.msra.mxu1 %v2098_v60  ;;  %8273 = vmatprep.mubr.msk.f32.mxu1 %vm9293_vm0, %v9294_v1 }
 0x24c   : > { %8276 = vmatprep.subr.mxu1 %v9294_v1 }
 0x24d   : > { %v2082_v22 = vpop.f32.mrb[2].mxu0 }
 0x24e   : > { %v9954_v23 = vadd.f32 %v7805_v21, %v2082_v22  ;;  %v8245_v24 = vpop.f32.mrb[3].mxu0  ;;  %v2086_v22 = vld [vmem:[%s10329_s9] sm:$0xff] }
 0x24f   : > { %v4384_v24 = vand.u32 4294901760, %v2086_v22 }
 0x250   : > { %v9958_v25 = vand.u32 4294901760, %v9954_v23 }
 0x252   : > { %8274 = vmatmul.mubr.f32.vlgmr.msra.gmra.mrb[2].mxu1 %v2163_v37  ;;  %v2643_v42 = vsub.f32 %v9954_v23, %v9958_v25 }
 0x253   : > { %8278 = vmatprep.mubr.msk.f32.mxu1 %vm9293_vm0, %v9294_v1  ;;  %8277 = vmatpush3.msra.mxu1 %v9958_v25 }
 0x254   : > { %8281 = vmatprep.subr.mxu1 %v9294_v1  ;;  %v2644_v55 = vand.u32 4294901760, %v2643_v42 }
 0x256   : > { %v2645_v0 = vsub.f32 %v2643_v42, %v2644_v55 }
 0x258   : > { %v2646_v60 = vand.u32 4294901760, %v2645_v0 }
 0x291   : > { %v3012_v7 = vpop.permute.xlu0 %3011 }
 0x292   : > { %v3015_v8 = vsel %vm2090_vm2, %v3012_v7, 0 }
 0x293   : > { %v3085_v9 = vand.u32 4294901760, %v3015_v8 }
 0x295   : > { %v3086_v10 = vsub.f32 %v3015_v8, %v3085_v9  ;;  %v3014_v11 = vpop.permute.xlu0 %3013 }
 0x296   : > { %v3017_v12 = vsel %vm2090_vm2, %v3014_v11, 0 }
 0x297   : > { %v3087_v13 = vand.u32 4294901760, %v3086_v10  ;;  %v3020_v14 = vand.u32 4294901760, %v3017_v12 }
 0x299   : > { %v3088_v15 = vsub.f32 %v3086_v10, %v3087_v13  ;;  %v3097_v16 = vsub.f32 %v3017_v12, %v3020_v14  ;;  %8307 = vmatpush3.xpose.msra.mxu0 %v3020_v14 }
 0x29a   : > { %8311 = vmatprep.subr.mxu0 %v9294_v1 }
 0x29b   : > { %v3089_v18 = vand.u32 4294901760, %v3088_v15  ;;  %v3098_v17 = vand.u32 4294901760, %v3097_v16 }
 0x29d   : > { %v3099_v19 = vsub.f32 %v3097_v16, %v3098_v17  ;;  %8309 = vmatmul.mubr.f32.vlgmr.msra.gmra.mrb[4].mxu0 %v3089_v18 }
 0x29e   : > { %8313 = vmatprep.mubr.msk.f32.mxu0 %vm9293_vm0, %v9294_v1 }
 0x29f   : > { %v3100_v20 = vand.u32 4294901760, %v3099_v19 }
 0x2a1   : > { %8312 = vmatpush3.xpose.msra.mxu0 %v3100_v20 }
 0x2a2   : > { %8316 = vmatprep.subr.mxu0 %v9294_v1 }
 0x2a5   : > { %8314 = vmatmul.mubr.f32.vlgmr.msra.gmra.mrb[4].mxu0 %v3085_v9 }
 0x2a6   : > { %8317 = vmatpush3.xpose.msra.mxu0 %v3097_v16  ;;  %8318 = vmatprep.mubr.msk.f32.mxu0 %vm9293_vm0, %v9294_v1 }
 0x2a7   : > { %8321 = vmatprep.subr.mxu0 %v9294_v1 }
 0x2ad   : > { %8319 = vmatmul.mubr.f32.vlgmr.msra.gmra.mrb[4].mxu0 %v3086_v10 }
 0x2ae   : > { %8322 = vmatpush3.xpose.msra.mxu0 %v3020_v14  ;;  %8323 = vmatprep.mubr.msk.f32.mxu0 %vm9293_vm0, %v9294_v1 }
 0x2af   : > { %8326 = vmatprep.subr.mxu0 %v9294_v1 }
 0x2b5   : > { %8324 = vmatmul.mubr.f32.vlgmr.msra.gmra.mrb[4].mxu0 %v3087_v13 }
 0x2b6   : > { %8327 = vmatpush3.xpose.msra.mxu0 %v3098_v17  ;;  %8328 = vmatprep.mubr.msk.f32.mxu0 %vm9293_vm0, %v9294_v1 }
 0x2b7   : > { %8331 = vmatprep.subr.mxu0 %v9294_v1 }
 0x2bd   : > { %8329 = vmatmul.mubr.f32.vlgmr.msra.gmra.mrb[4].mxu0 %v3085_v9 }
 0x2be   : > { %8332 = vmatpush3.xpose.msra.mxu0 %v3020_v14  ;;  %8333 = vmatprep.mubr.msk.f32.mxu0 %vm9293_vm0, %v9294_v1  ;;  %v2087_v14 = vld [vmem:[%s10329_s9 + $0x8] sm:$0xff] }
 0x2bf   : > { %8366 = vmatprep.subr.mxu0 %v9294_v1  ;;  %v3935_v15 = vand.u32 4294901760, %v2087_v14 }
 0x2c1   : > { %v4012_v16 = vsub.f32 %v2087_v14, %v3935_v15 }
 0x2c3   : > { %v4013_v18 = vand.u32 4294901760, %v4012_v16 }
 0x2c5   : > { %8334 = vmatmul.mubr.f32.vlgmr.msra.gmra.mrb[4].mxu0 %v3085_v9  ;;  %v4014_v17 = vsub.f32 %v4012_v16, %v4013_v18 }
 0x2c6   : > { %8368 = vmatprep.mubr.msk.f32.mxu0 %vm9293_vm0, %v9294_v1  ;;  %8367 = vmatpush3.msra.mxu0 %v3935_v15 }
 0x2c7   : > { %8376 = vmatprep.subr.mxu0 %v9294_v1  ;;  %v4015_v19 = vand.u32 4294901760, %v4014_v17 }
 0x325   : > { %v2539_v26 = vpop.f32.mrb[2].mxu1 }
 0x326   : > { %v2543_v28 = vmul.f32 0.35355338, %v2539_v26  ;;  %v8275_v29 = vpop.f32.mrb[3].mxu1 }
 0x328   : > { %v2550_v30 = vadd.f32 %v9969_v27, %v2543_v28 }
 0x32a   : > { %v2551_v31 = vsel %vm2090_vm2, %v2550_v30, -inf }
 0x32b   : > { %2552 = vmax.xlane.f32.xlu1 %v2551_v31 }
 0x398   : > { %v3461_v32 = vpop.f32.mrb[4].mxu0 }
 0x399   : > { %v3465_v33 = vmul.f32 0.35355338, %v3461_v32  ;;  %v8335_v34 = vpop.f32.mrb[5].mxu0 }
 0x39b   : > { %v3466_v35 = vadd.f32 %v9969_v27, %v3465_v33 }
 0x39d   : > { %v3467_v36 = vsel %vm2090_vm2, %v3466_v35, -inf }
 0x39e   : > { %3468 = vmax.xlane.f32.xlu1 %v3467_v36 }
 0x3b8   : > { %v2553_v38 = vpop.xlane.xlu1 %2552 }
 0x3b9   : > { %v2554_v39 = vsub.f32 %v2550_v30, %v2553_v38 }
 0x3bb   : > { %v2555_v40 = vmul.f32 1.442695, %v2554_v39 }
 0x3bd   : > { %8947 = vpow2.f32 %v2555_v40 }
 0x3c7   : > { %v8948_v41 = vpop.eup %8947 }
 0x3c8   : > { %v2557_v43 = vsel %vm2090_vm2, %v8948_v41, 0.0 }
 0x3c9   : > { %2558 = vadd.xlane.f32.xlu0 %v2557_v43 }
 0x42b   : > { %v3469_v44 = vpop.xlane.xlu1 %3468 }
 0x42c   : > { %v3470_v45 = vsub.f32 %v3466_v35, %v3469_v44 }
 0x42e   : > { %v3471_v46 = vmul.f32 1.442695, %v3470_v45 }
 0x430   : > { %8949 = vpow2.f32 %v3471_v46 }
 0x43a   : > { %v8950_v47 = vpop.eup %8949 }
 0x43b   : > { %v3473_v48 = vsel %vm2090_vm2, %v8950_v47, 0.0 }
 0x43c   : > { %3474 = vadd.xlane.f32.xlu1 %v3473_v48 }
 0x44d   : > { %3479 = vrot.lane.b32.xlu1 %v9954_v23, %s9295_s24  ;;  %s10333_s24 = sld [smem:[#allocation33_spill]] }
 0x451   : > { %4829 = vrot.lane.b32.xlu1 %v9907_v54, %s9296_s12 }
 0x453   : > { %s10227_s6 = scalar_lea.hbm %s10333_s24, %s7811_s16 }
 0x455   : > { %4831 = vrot.lane.b32.xlu1 %v9909_v57, %s9296_s12 }
 0x456   : > { %v2559_v49 = vpop.xlane.xlu0 %2558 }
 0x457   : > { %8951 = vrcp.f32 %v2559_v49 }
 0x461   : > { %v8952_v51 = vpop.eup %8951 }
 0x462   : > { %v2561_v52 = vmul.f32 %v8952_v51, %v8948_v41 }
 0x464   : > { %v2563_v50 = vsel %vm2090_vm2, %v2561_v52, 0 }
 0x465   : > { %v2631_v53 = vand.u32 4294901760, %v2563_v50 }
 0x467   : > { %v2632_v56 = vsub.f32 %v2563_v50, %v2631_v53 }
 0x469   : > { %v2633_v58 = vand.u32 4294901760, %v2632_v56 }
 0x46b   : > { %v2634_v37 = vsub.f32 %v2632_v56, %v2633_v58 }
 0x46d   : > { %v2635_v59 = vand.u32 4294901760, %v2634_v37 }
 0x46f   : > { %8279 = vmatmul.mubr.f32.vlgmr.msra.gmra.mrb[4].mxu1 %v2635_v59 }
 0x470   : > { %8282 = vmatpush3.msra.mxu1 %v2646_v60  ;;  %8283 = vmatprep.mubr.msk.f32.mxu1 %vm9293_vm0, %v9294_v1 }
 0x471   : > { %8286 = vmatprep.subr.mxu1 %v9294_v1 }
 0x477   : > { %8284 = vmatmul.mubr.f32.vlgmr.msra.gmra.mrb[4].mxu1 %v2631_v53 }
 0x478   : > { %8287 = vmatpush3.msra.mxu1 %v2643_v42  ;;  %8288 = vmatprep.mubr.msk.f32.mxu1 %vm9293_vm0, %v9294_v1 }
 0x479   : > { %8291 = vmatprep.subr.mxu1 %v9294_v1 }
 0x47f   : > { %8289 = vmatmul.mubr.f32.vlgmr.msra.gmra.mrb[4].mxu1 %v2632_v56 }
 0x480   : > { %8292 = vmatpush3.msra.mxu1 %v9958_v25  ;;  %8293 = vmatprep.mubr.msk.f32.mxu1 %vm9293_vm0, %v9294_v1 }
 0x481   : > { %8296 = vmatprep.subr.mxu1 %v9294_v1 }
 0x487   : > { %8294 = vmatmul.mubr.f32.vlgmr.msra.gmra.mrb[4].mxu1 %v2633_v58 }
 0x488   : > { %8297 = vmatpush3.msra.mxu1 %v2644_v55  ;;  %8298 = vmatprep.mubr.msk.f32.mxu1 %vm9293_vm0, %v9294_v1 }
 0x489   : > { %8301 = vmatprep.subr.mxu1 %v9294_v1 }
 0x48f   : > { %8299 = vmatmul.mubr.f32.vlgmr.msra.gmra.mrb[4].mxu1 %v2631_v53 }
 0x490   : > { %8302 = vmatpush3.msra.mxu1 %v9958_v25  ;;  %8303 = vmatprep.mubr.msk.f32.mxu1 %vm9293_vm0, %v9294_v1  ;;  %v10032_v25 = vsub.f32 %v2086_v22, %v4384_v24 }
 0x491   : > { %8336 = vmatprep.subr.mxu1 %v9294_v1 }
 0x492   : > { %v4462_v31 = vand.u32 4294901760, %v10032_v25 }
 0x494   : > { %v4463_v36 = vsub.f32 %v10032_v25, %v4462_v31 }
 0x496   : > { %v4464_v43 = vand.u32 4294901760, %v4463_v36 }
 0x497   : > { %8304 = vmatmul.mubr.f32.vlgmr.msra.gmra.mrb[4].mxu1 %v2631_v53 }
 0x498   : > { %8338 = vmatprep.mubr.msk.f32.mxu1 %vm9293_vm0, %v9294_v1 }
 0x4c9   : > { %v3475_v61 = vpop.xlane.xlu1 %3474 }
 0x4ca   : > { %8953 = vrcp.f32 %v3475_v61 }
 0x4cd   : > { %v3480_v62 = vpop.permute.xlu1 %3479 }
 0x4ce   : > { %v3486_v63 = vand.u32 4294901760, %v3480_v62 }
 0x4d0   : > { %8337 = vmatpush3.msra.mxu1 %v3486_v63  ;;  %v3563_v4 = vsub.f32 %v3480_v62, %v3486_v63 }
 0x4d1   : > { %8341 = vmatprep.subr.mxu1 %v9294_v1  ;;  %v4830_v39 = vpop.permute.xlu1 %4829 }
 0x4d2   : > { %v3564_v7 = vand.u32 4294901760, %v3563_v4  ;;  %v4833_v46 = vsel %vm2090_vm2, %v4830_v39, 0 }
 0x4d3   : > { %v4903_v49 = vand.u32 4294901760, %v4833_v46 }
 0x4d4   : > { %v8954_v2 = vpop.eup %8953  ;;  %v3565_v10 = vsub.f32 %v3563_v4, %v3564_v7 }
 0x4d5   : > { %v3477_v3 = vmul.f32 %v8954_v2, %v8950_v47  ;;  %v4832_v45 = vpop.permute.xlu1 %4831  ;;  %v4904_v42 = vsub.f32 %v4833_v46, %v4903_v49 }
 0x4d6   : > { %v3566_v13 = vand.u32 4294901760, %v3565_v10  ;;  %v4835_v48 = vsel %vm2090_vm2, %v4832_v45, 0 }
 0x4d7   : > { %v3483_v5 = vsel %vm2090_vm2, %v3477_v3, 0  ;;  %v4838_v51 = vand.u32 4294901760, %v4835_v48  ;;  %v4905_v53 = vand.u32 4294901760, %v4904_v42 }
 0x4d8   : > { %v3551_v6 = vand.u32 4294901760, %v3483_v5 }
 0x4d9   : > { %v4915_v50 = vsub.f32 %v4835_v48, %v4838_v51  ;;  %v4906_v56 = vsub.f32 %v4904_v42, %v4905_v53 }
 0x4da   : > { %v3552_v8 = vsub.f32 %v3483_v5, %v3551_v6 }
 0x4db   : > { %v4916_v55 = vand.u32 4294901760, %v4915_v50  ;;  %v4907_v0 = vand.u32 4294901760, %v4906_v56 }
 0x4dc   : > { %v3553_v9 = vand.u32 4294901760, %v3552_v8 }
 0x4dd   : > { %v4917_v58 = vsub.f32 %v4915_v50, %v4916_v55 }
 0x4de   : > { %v3554_v11 = vsub.f32 %v3552_v8, %v3553_v9 }
 0x4df   : > { %v4918_v37 = vand.u32 4294901760, %v4917_v58 }
 0x4e0   : > { %v3555_v12 = vand.u32 4294901760, %v3554_v11 }
 0x4e2   : > { %8339 = vmatmul.mubr.f32.vlgmr.msra.gmra.mrb[6].mxu1 %v3555_v12 }
 0x4e3   : > { %8342 = vmatpush3.msra.mxu1 %v3566_v13  ;;  %8343 = vmatprep.mubr.msk.f32.mxu1 %vm9293_vm0, %v9294_v1 }
 0x4e4   : > { %8346 = vmatprep.subr.mxu1 %v9294_v1 }
 0x4ea   : > { %8344 = vmatmul.mubr.f32.vlgmr.msra.gmra.mrb[6].mxu1 %v3551_v6 }
 0x4eb   : > { %8347 = vmatpush3.msra.mxu1 %v3563_v4  ;;  %8348 = vmatprep.mubr.msk.f32.mxu1 %vm9293_vm0, %v9294_v1 }
 0x4ec   : > { %8351 = vmatprep.subr.mxu1 %v9294_v1 }
 0x4f2   : > { %8349 = vmatmul.mubr.f32.vlgmr.msra.gmra.mrb[6].mxu1 %v3552_v8 }
 0x4f3   : > { %8352 = vmatpush3.msra.mxu1 %v3486_v63  ;;  %8353 = vmatprep.mubr.msk.f32.mxu1 %vm9293_vm0, %v9294_v1 }
 0x4f4   : > { %8356 = vmatprep.subr.mxu1 %v9294_v1 }
 0x4fa   : > { %8354 = vmatmul.mubr.f32.vlgmr.msra.gmra.mrb[6].mxu1 %v3553_v9 }
 0x4fb   : > { %8357 = vmatpush3.msra.mxu1 %v3564_v7  ;;  %8358 = vmatprep.mubr.msk.f32.mxu1 %vm9293_vm0, %v9294_v1 }
 0x4fc   : > { %8361 = vmatprep.subr.mxu1 %v9294_v1 }
 0x502   : > { %8359 = vmatmul.mubr.f32.vlgmr.msra.gmra.mrb[6].mxu1 %v3551_v6 }
 0x503   : > { %8362 = vmatpush3.msra.mxu1 %v3486_v63  ;;  %8363 = vmatprep.mubr.msk.f32.mxu1 %vm9293_vm0, %v9294_v1 }
 0x504   : > { %8371 = vmatprep.subr.mxu1 %v9294_v1 }
 0x50a   : > { %8364 = vmatmul.mubr.f32.vlgmr.msra.gmra.mrb[6].mxu1 %v3551_v6 }
 0x50b   : > { %8373 = vmatprep.mubr.msk.f32.mxu1 %vm9293_vm0, %v9294_v1  ;;  %8372 = vmatpush3.msra.mxu1 %v4015_v19 }
 0x50c   : > { %8381 = vmatprep.subr.mxu1 %v9294_v1 }
 0x56a   : > { %v3007_v20 = vpop.f32.mrb[4].mxu1 }
 0x56b   : > { %v8305_v21 = vpop.f32.mrb[5].mxu1  ;;  %v4381_v32 = vsel %vm2090_vm2, %v3007_v20, 0 }
 0x56c   : > { %v4449_v34 = vand.u32 4294901760, %v4381_v32 }
 0x56e   : > { %v4450_v40 = vsub.f32 %v4381_v32, %v4449_v34 }
 0x570   : > { %v4451_v44 = vand.u32 4294901760, %v4450_v40 }
 0x572   : > { %v4452_v47 = vsub.f32 %v4450_v40, %v4451_v44 }
 0x574   : > { %v4453_v52 = vand.u32 4294901760, %v4452_v47 }
 0x5dd   : > { %v3927_v26 = vpop.f32.mrb[6].mxu1 }
 0x5de   : > { %v3932_v28 = vsel %vm2090_vm2, %v3927_v26, 0  ;;  %v8365_v29 = vpop.f32.mrb[7].mxu1 }
 0x5df   : > { %v4000_v30 = vand.u32 4294901760, %v3932_v28 }
 0x5e1   : > { %v4001_v33 = vsub.f32 %v3932_v28, %v4000_v30  ;;  %8374 = vmatmul.mubr.f32.vlgmr.msra.gmra.mrb[8].mxu1 %v4000_v30 }
 0x5e2   : > { %8382 = vmatpush3.msra.mxu1 %v3935_v15  ;;  %8383 = vmatprep.mubr.msk.f32.mxu1 %vm9293_vm0, %v9294_v1 }
 0x5e3   : > { %v4002_v35 = vand.u32 4294901760, %v4001_v33  ;;  %8391 = vmatprep.subr.mxu1 %v9294_v1 }
 0x5e5   : > { %v4003_v38 = vsub.f32 %v4001_v33, %v4002_v35  ;;  %8384 = vmatmul.mubr.f32.vlgmr.msra.gmra.mrb[10].mxu1 %v4002_v35 }
 0x5e6   : > { %8392 = vmatpush3.msra.mxu1 %v3935_v15  ;;  %8393 = vmatprep.mubr.msk.f32.mxu1 %vm9293_vm0, %v9294_v1 }
 0x5e7   : > { %v4004_v41 = vand.u32 4294901760, %v4003_v38  ;;  %8401 = vmatprep.subr.mxu1 %v9294_v1 }
 0x5e9   : > { %8369 = vmatmul.mubr.f32.vlgmr.msra.gmra.mrb[6].mxu0 %v4004_v41  ;;  %8394 = vmatmul.mubr.f32.vlgmr.msra.gmra.mrb[12].mxu1 %v4000_v30 }
 0x5ea   : > { %8377 = vmatpush3.msra.mxu0 %v4012_v16  ;;  %8378 = vmatprep.mubr.msk.f32.mxu0 %vm9293_vm0, %v9294_v1 }
 0x5eb   : > { %8402 = vmatpush3.msra.mxu1 %v4464_v43  ;;  %8403 = vmatprep.mubr.msk.f32.mxu1 %vm9293_vm0, %v9294_v1 }
 0x5ec   : > { %8386 = vmatprep.subr.mxu0 %v9294_v1  ;;  %8411 = vmatprep.subr.mxu1 %v9294_v1 }
 0x5ed   : > { %8379 = vmatmul.mubr.f32.vlgmr.msra.gmra.mrb[8].mxu0 %v4001_v33  ;;  %8404 = vmatmul.mubr.f32.vlgmr.msra.gmra.mrb[14].mxu1 %v4449_v34 }
 0x5ee   : > { %8387 = vmatpush3.msra.mxu0 %v4013_v18  ;;  %8388 = vmatprep.mubr.msk.f32.mxu0 %vm9293_vm0, %v9294_v1 }
 0x5ef   : > { %8412 = vmatpush3.msra.mxu1 %v4384_v24  ;;  %8413 = vmatprep.mubr.msk.f32.mxu1 %vm9293_vm0, %v9294_v1 }
 0x5f0   : > { %8396 = vmatprep.subr.mxu0 %v9294_v1  ;;  %8421 = vmatprep.subr.mxu1 %v9294_v1 }
 0x5f1   : > { %8389 = vmatmul.mubr.f32.vlgmr.msra.gmra.mrb[10].mxu0 %v4000_v30  ;;  %8414 = vmatmul.mubr.f32.vlgmr.msra.gmra.mrb[16].mxu1 %v4451_v44 }
 0x5f2   : > { %8397 = vmatpush3.msra.mxu0 %v4384_v24  ;;  %8398 = vmatprep.mubr.msk.f32.mxu0 %vm9293_vm0, %v9294_v1 }
 0x5f3   : > { %8422 = vmatpush3.msra.mxu1 %v4384_v24  ;;  %8423 = vmatprep.mubr.msk.f32.mxu1 %vm9293_vm0, %v9294_v1 }
 0x5f4   : > { %8406 = vmatprep.subr.mxu0 %v9294_v1  ;;  %8456 = vmatprep.subr.mxu1 %v9294_v1 }
 0x5f5   : > { %8399 = vmatmul.mubr.f32.vlgmr.msra.gmra.mrb[12].mxu0 %v4453_v52  ;;  %8424 = vmatmul.mubr.f32.vlgmr.msra.gmra.mrb[18].mxu1 %v4449_v34 }
 0x5f6   : > { %8407 = vmatpush3.msra.mxu0 %v10032_v25  ;;  %8408 = vmatprep.mubr.msk.f32.mxu0 %vm9293_vm0, %v9294_v1 }
 0x5f7   : > { %8416 = vmatprep.subr.mxu0 %v9294_v1  ;;  %8458 = vmatprep.mubr.msk.f32.mxu1 %vm9293_vm0, %v9294_v1 }
 0x5f9   : > { %8409 = vmatmul.mubr.f32.vlgmr.msra.gmra.mrb[14].mxu0 %v4450_v40 }
 0x5fa   : > { %8417 = vmatpush3.msra.mxu0 %v4462_v31  ;;  %8418 = vmatprep.mubr.msk.f32.mxu0 %vm9293_vm0, %v9294_v1 }
 0x5fb   : > { %8426 = vmatprep.subr.mxu0 %v9294_v1 }
 0x5fd   : > { %8419 = vmatmul.mubr.f32.vlgmr.msra.gmra.mrb[16].mxu0 %v4449_v34 }
 0x5fe   : > { %8428 = vmatprep.mubr.msk.f32.mxu0 %vm9293_vm0, %v9294_v1 }
 0x601   : > { %8427 = vmatpush3.xpose.msra.mxu0 %v4838_v51 }
 0x602   : > { %8431 = vmatprep.subr.mxu0 %v9294_v1 }
 0x604   : > { %8429 = vmatmul.mubr.f32.vlgmr.msra.gmra.mrb[18].mxu0 %v4907_v0 }
 0x605   : > { %8432 = vmatpush3.xpose.msra.mxu0 %v4918_v37  ;;  %8433 = vmatprep.mubr.msk.f32.mxu0 %vm9293_vm0, %v9294_v1  ;;  %v2088_v37 = vld [vmem:[%s10329_s9 + $0x10] sm:$0xff] }
 0x606   : > { %8436 = vmatprep.subr.mxu0 %v9294_v1 }
 0x60c   : > { %8434 = vmatmul.mubr.f32.vlgmr.msra.gmra.mrb[18].mxu0 %v4903_v49 }
 0x60d   : > { %8437 = vmatpush3.xpose.msra.mxu0 %v4915_v50  ;;  %8438 = vmatprep.mubr.msk.f32.mxu0 %vm9293_vm0, %v9294_v1 }
 0x60e   : > { %8441 = vmatprep.subr.mxu0 %v9294_v1 }
 0x614   : > { %8439 = vmatmul.mubr.f32.vlgmr.msra.gmra.mrb[18].mxu0 %v4904_v42 }
 0x615   : > { %8442 = vmatpush3.xpose.msra.mxu0 %v4838_v51  ;;  %8443 = vmatprep.mubr.msk.f32.mxu0 %vm9293_vm0, %v9294_v1 }
 0x616   : > { %8446 = vmatprep.subr.mxu0 %v9294_v1 }
 0x61c   : > { %8444 = vmatmul.mubr.f32.vlgmr.msra.gmra.mrb[18].mxu0 %v4905_v53 }
 0x61d   : > { %8447 = vmatpush3.xpose.msra.mxu0 %v4916_v55  ;;  %8448 = vmatprep.mubr.msk.f32.mxu0 %vm9293_vm0, %v9294_v1 }
 0x61e   : > { %8451 = vmatprep.subr.mxu0 %v9294_v1 }
 0x624   : > { %8449 = vmatmul.mubr.f32.vlgmr.msra.gmra.mrb[18].mxu0 %v4903_v49 }
 0x625   : > { %8452 = vmatpush3.xpose.msra.mxu0 %v4838_v51  ;;  %8453 = vmatprep.mubr.msk.f32.mxu0 %vm9293_vm0, %v9294_v1 }
 0x626   : > { %8486 = vmatprep.subr.mxu0 %v9294_v1 }
 0x62c   : > { %8454 = vmatmul.mubr.f32.vlgmr.msra.gmra.mrb[18].mxu0 %v4903_v49 }
 0x62d   : > { %8488 = vmatprep.mubr.msk.f32.mxu0 %vm9293_vm0, %v9294_v1 }
 0x6b4   : > { %v4082_v59 = vpop.f32.mrb[8].mxu1 }
 0x6b5   : > { %v8375_v60 = vpop.f32.mrb[9].mxu1 }
 0x6b8   : > { %v4230_v61 = vpop.f32.mrb[10].mxu1 }
 0x6b9   : > { %v8385_v62 = vpop.f32.mrb[11].mxu1 }
 0x6bc   : > { %v4006_v63 = vpop.f32.mrb[6].mxu0  ;;  %v4376_v2 = vpop.f32.mrb[12].mxu1 }
 0x6bd   : > { %v4083_v3 = vadd.f32 %v4082_v59, %v4006_v63  ;;  %v8370_v4 = vpop.f32.mrb[7].mxu0  ;;  %v8395_v5 = vpop.f32.mrb[13].mxu1  ;;  %v5752_v59 = vand.u32 4294901760, %v2088_v37 }
 0x6bf   : > { %v5829_v60 = vsub.f32 %v2088_v37, %v5752_v59  ;;  %8487 = vmatpush3.msra.mxu0 %v5752_v59 }
 0x6c0   : > { %v4156_v6 = vpop.f32.mrb[8].mxu0  ;;  %v4531_v7 = vpop.f32.mrb[14].mxu1  ;;  %8496 = vmatprep.subr.mxu0 %v9294_v1 }
 0x6c1   : > { %v4157_v8 = vadd.f32 %v4156_v6, %v4083_v3  ;;  %v8380_v9 = vpop.f32.mrb[9].mxu0  ;;  %v8405_v10 = vpop.f32.mrb[15].mxu1 }
 0x6c3   : > { %v4231_v11 = vadd.f32 %v4230_v61, %v4157_v8  ;;  %v5830_v61 = vand.u32 4294901760, %v5829_v60 }
 0x6c4   : > { %v4304_v12 = vpop.f32.mrb[10].mxu0  ;;  %v4679_v13 = vpop.f32.mrb[16].mxu1 }
 0x6c5   : > { %v4305_v14 = vadd.f32 %v4304_v12, %v4231_v11  ;;  %v8390_v15 = vpop.f32.mrb[11].mxu0  ;;  %v8415_v16 = vpop.f32.mrb[17].mxu1  ;;  %v5831_v62 = vsub.f32 %v5829_v60, %v5830_v61 }
 0x6c7   : > { %v4377_v18 = vadd.f32 %v4376_v2, %v4305_v14  ;;  %v5832_v63 = vand.u32 4294901760, %v5831_v62 }
 0x6c8   : > { %v4455_v17 = vpop.f32.mrb[12].mxu0  ;;  %v4825_v19 = vpop.f32.mrb[18].mxu1 }
 0x6c9   : > { %v4456_v20 = vadd.f32 %v4455_v17, %v4377_v18  ;;  %v8400_v21 = vpop.f32.mrb[13].mxu0  ;;  %v8425_v22 = vpop.f32.mrb[19].mxu1 }
 0x6cb   : > { %v4532_v24 = vadd.f32 %v4531_v7, %v4456_v20 }
 0x6cc   : > { %v4605_v25 = vpop.f32.mrb[14].mxu0 }
 0x6cd   : > { %v4606_v26 = vadd.f32 %v4605_v25, %v4532_v24  ;;  %v8410_v28 = vpop.f32.mrb[15].mxu0 }
 0x6cf   : > { %v4680_v29 = vadd.f32 %v4679_v13, %v4606_v26 }
 0x6d0   : > { %v4753_v30 = vpop.f32.mrb[16].mxu0 }
 0x6d1   : > { %v4754_v31 = vadd.f32 %v4753_v30, %v4680_v29  ;;  %v8420_v32 = vpop.f32.mrb[17].mxu0 }
 0x6d3   : > { %v10093_v33 = vadd.f32 %v4825_v19, %v4754_v31 }
 0x6ff   : > { %v5279_v34 = vpop.f32.mrb[18].mxu0 }
 0x700   : > { %v5283_v35 = vmul.f32 0.35355338, %v5279_v34  ;;  %v8455_v36 = vpop.f32.mrb[19].mxu0 }
 0x702   : > { %v5284_v38 = vadd.f32 %v9969_v27, %v5283_v35 }
 0x704   : > { %v5285_v39 = vsel %vm2090_vm2, %v5284_v38, -inf }
 0x705   : > { %5286 = vmax.xlane.f32.xlu1 %v5285_v39 }
 0x792   : > { %v5287_v40 = vpop.xlane.xlu1 %5286 }
 0x793   : > { %v5288_v41 = vsub.f32 %v5284_v38, %v5287_v40 }
 0x795   : > { %v5289_v43 = vmul.f32 1.442695, %v5288_v41 }
 0x797   : > { %8955 = vpow2.f32 %v5289_v43 }
 0x7a1   : > { %v8956_v44 = vpop.eup %8955 }
 0x7a2   : > { %v5291_v45 = vsel %vm2090_vm2, %v8956_v44, 0.0 }
 0x7a3   : > { %5292 = vadd.xlane.f32.xlu0 %v5291_v45 }
 0x7b9   : > { %5296 = vrot.lane.b32.xlu0 %v9954_v23, %s9296_s12  ;;  %s10331_s12 = sld [smem:[#allocation31_spill]] }
 0x7bd   : > { %6198 = vrot.lane.b32.xlu0 %v9907_v54, %s9297_s23 }
 0x7c1   : > { %6200 = vrot.lane.b32.xlu0 %v9909_v57, %s9297_s23 }
 0x830   : > { %v5293_v46 = vpop.xlane.xlu0 %5292 }
 0x831   : > { %8957 = vrcp.f32 %v5293_v46 }
 0x834   : > { %v5297_v47 = vpop.permute.xlu0 %5296 }
 0x835   : > { %v5303_v48 = vand.u32 4294901760, %v5297_v47 }
 0x837   : > { %8457 = vmatpush3.msra.mxu1 %v5303_v48  ;;  %v5380_v52 = vsub.f32 %v5297_v47, %v5303_v48 }
 0x838   : > { %8461 = vmatprep.subr.mxu1 %v9294_v1  ;;  %v6199_v2 = vpop.permute.xlu0 %6198 }
 0x839   : > { %v5381_v53 = vand.u32 4294901760, %v5380_v52  ;;  %v6202_v9 = vsel %vm2090_vm2, %v6199_v2, 0 }
 0x83a   : > { %v6272_v13 = vand.u32 4294901760, %v6202_v9 }
 0x83b   : > { %v8958_v49 = vpop.eup %8957  ;;  %v5382_v54 = vsub.f32 %v5380_v52, %v5381_v53 }
 0x83c   : > { %v5295_v51 = vmul.f32 %v8958_v49, %v8956_v44  ;;  %v6201_v7 = vpop.permute.xlu0 %6200  ;;  %v6273_v16 = vsub.f32 %v6202_v9, %v6272_v13 }
 0x83d   : > { %v5383_v57 = vand.u32 4294901760, %v5382_v54  ;;  %v6204_v11 = vsel %vm2090_vm2, %v6201_v7, 0 }
 0x83e   : > { %v5300_v42 = vsel %vm2090_vm2, %v5295_v51, 0  ;;  %v6207_v14 = vand.u32 4294901760, %v6204_v11  ;;  %v6274_v17 = vand.u32 4294901760, %v6273_v16 }
 0x83f   : > { %v5368_v50 = vand.u32 4294901760, %v5300_v42 }
 0x840   : > { %v6284_v18 = vsub.f32 %v6204_v11, %v6207_v14  ;;  %v6275_v20 = vsub.f32 %v6273_v16, %v6274_v17 }
 0x841   : > { %v5369_v55 = vsub.f32 %v5300_v42, %v5368_v50 }
 0x842   : > { %v6285_v19 = vand.u32 4294901760, %v6284_v18  ;;  %v6276_v22 = vand.u32 4294901760, %v6275_v20 }
 0x843   : > { %v5370_v56 = vand.u32 4294901760, %v5369_v55 }
 0x844   : > { %v6286_v21 = vsub.f32 %v6284_v18, %v6285_v19 }
 0x845   : > { %v5371_v58 = vsub.f32 %v5369_v55, %v5370_v56 }
 0x846   : > { %v6287_v24 = vand.u32 4294901760, %v6286_v21 }
 0x847   : > { %v5372_v0 = vand.u32 4294901760, %v5371_v58 }
 0x849   : > { %8459 = vmatmul.mubr.f32.vlgmr.msra.gmra.mrb[20].mxu1 %v5372_v0 }
 0x84a   : > { %8462 = vmatpush3.msra.mxu1 %v5383_v57  ;;  %8463 = vmatprep.mubr.msk.f32.mxu1 %vm9293_vm0, %v9294_v1 }
 0x84b   : > { %8466 = vmatprep.subr.mxu1 %v9294_v1 }
 0x851   : > { %8464 = vmatmul.mubr.f32.vlgmr.msra.gmra.mrb[20].mxu1 %v5368_v50 }
 0x852   : > { %8467 = vmatpush3.msra.mxu1 %v5380_v52  ;;  %8468 = vmatprep.mubr.msk.f32.mxu1 %vm9293_vm0, %v9294_v1 }
 0x853   : > { %8471 = vmatprep.subr.mxu1 %v9294_v1 }
 0x859   : > { %8469 = vmatmul.mubr.f32.vlgmr.msra.gmra.mrb[20].mxu1 %v5369_v55 }
 0x85a   : > { %8472 = vmatpush3.msra.mxu1 %v5303_v48  ;;  %8473 = vmatprep.mubr.msk.f32.mxu1 %vm9293_vm0, %v9294_v1 }
 0x85b   : > { %8476 = vmatprep.subr.mxu1 %v9294_v1 }
 0x861   : > { %8474 = vmatmul.mubr.f32.vlgmr.msra.gmra.mrb[20].mxu1 %v5370_v56 }
 0x862   : > { %8477 = vmatpush3.msra.mxu1 %v5381_v53  ;;  %8478 = vmatprep.mubr.msk.f32.mxu1 %vm9293_vm0, %v9294_v1 }
 0x863   : > { %8481 = vmatprep.subr.mxu1 %v9294_v1 }
 0x869   : > { %8479 = vmatmul.mubr.f32.vlgmr.msra.gmra.mrb[20].mxu1 %v5368_v50 }
 0x86a   : > { %8482 = vmatpush3.msra.mxu1 %v5303_v48  ;;  %8483 = vmatprep.mubr.msk.f32.mxu1 %vm9293_vm0, %v9294_v1 }
 0x86b   : > { %8491 = vmatprep.subr.mxu1 %v9294_v1 }
 0x871   : > { %8484 = vmatmul.mubr.f32.vlgmr.msra.gmra.mrb[20].mxu1 %v5368_v50 }
 0x872   : > { %8493 = vmatprep.mubr.msk.f32.mxu1 %vm9293_vm0, %v9294_v1  ;;  %8492 = vmatpush3.msra.mxu1 %v5832_v63 }
 0x873   : > { %8501 = vmatprep.subr.mxu1 %v9294_v1 }
 0x944   : > { %v5744_v3 = vpop.f32.mrb[20].mxu1 }
 0x945   : > { %v5749_v4 = vsel %vm2090_vm2, %v5744_v3, 0  ;;  %v8485_v5 = vpop.f32.mrb[21].mxu1 }
 0x946   : > { %v5817_v6 = vand.u32 4294901760, %v5749_v4 }
 0x948   : > { %v5818_v8 = vsub.f32 %v5749_v4, %v5817_v6  ;;  %8494 = vmatmul.mubr.f32.vlgmr.msra.gmra.mrb[22].mxu1 %v5817_v6  ;;  %v2089_v4 = vld [vmem:[%s10329_s9 + $0x18] sm:$0xff] }
 0x949   : > { %8502 = vmatpush3.msra.mxu1 %v5752_v59  ;;  %8503 = vmatprep.mubr.msk.f32.mxu1 %vm9293_vm0, %v9294_v1  ;;  %v7121_v5 = vand.u32 4294901760, %v2089_v4 }
 0x94a   : > { %v5819_v10 = vand.u32 4294901760, %v5818_v8  ;;  %8511 = vmatprep.subr.mxu1 %v9294_v1 }
 0x94c   : > { %v5820_v12 = vsub.f32 %v5818_v8, %v5819_v10  ;;  %8504 = vmatmul.mubr.f32.vlgmr.msra.gmra.mrb[24].mxu1 %v5819_v10 }
 0x94d   : > { %8512 = vmatpush3.msra.mxu1 %v5752_v59  ;;  %8513 = vmatprep.mubr.msk.f32.mxu1 %vm9293_vm0, %v9294_v1 }
 0x94e   : > { %v5821_v15 = vand.u32 4294901760, %v5820_v12  ;;  %8546 = vmatprep.subr.mxu1 %v9294_v1 }
 0x950   : > { %8489 = vmatmul.mubr.f32.vlgmr.msra.gmra.mrb[20].mxu0 %v5821_v15  ;;  %8514 = vmatmul.mubr.f32.vlgmr.msra.gmra.mrb[26].mxu1 %v5817_v6 }
 0x951   : > { %8497 = vmatpush3.msra.mxu0 %v5829_v60  ;;  %8498 = vmatprep.mubr.msk.f32.mxu0 %vm9293_vm0, %v9294_v1 }
 0x952   : > { %8506 = vmatprep.subr.mxu0 %v9294_v1  ;;  %8548 = vmatprep.mubr.msk.f32.mxu1 %vm9293_vm0, %v9294_v1 }
 0x954   : > { %8499 = vmatmul.mubr.f32.vlgmr.msra.gmra.mrb[22].mxu0 %v5818_v8 }
 0x955   : > { %8507 = vmatpush3.msra.mxu0 %v5830_v61  ;;  %8508 = vmatprep.mubr.msk.f32.mxu0 %vm9293_vm0, %v9294_v1 }
 0x956   : > { %8516 = vmatprep.subr.mxu0 %v9294_v1 }
 0x958   : > { %8509 = vmatmul.mubr.f32.vlgmr.msra.gmra.mrb[24].mxu0 %v5817_v6  ;;  %v7198_v6 = vsub.f32 %v2089_v4, %v7121_v5 }
 0x959   : > { %8518 = vmatprep.mubr.msk.f32.mxu0 %vm9293_vm0, %v9294_v1 }
 0x95a   : > { %v7199_v7 = vand.u32 4294901760, %v7198_v6 }
 0x95c   : > { %8517 = vmatpush3.xpose.msra.mxu0 %v6207_v14  ;;  %v7200_v8 = vsub.f32 %v7198_v6, %v7199_v7 }
 0x95d   : > { %8521 = vmatprep.subr.mxu0 %v9294_v1 }
 0x95e   : > { %v7201_v9 = vand.u32 4294901760, %v7200_v8 }
 0x95f   : > { %8519 = vmatmul.mubr.f32.vlgmr.msra.gmra.mrb[26].mxu0 %v6276_v22 }
 0x960   : > { %8522 = vmatpush3.xpose.msra.mxu0 %v6287_v24  ;;  %8523 = vmatprep.mubr.msk.f32.mxu0 %vm9293_vm0, %v9294_v1 }
 0x961   : > { %8526 = vmatprep.subr.mxu0 %v9294_v1 }
 0x967   : > { %8524 = vmatmul.mubr.f32.vlgmr.msra.gmra.mrb[26].mxu0 %v6272_v13 }
 0x968   : > { %8527 = vmatpush3.xpose.msra.mxu0 %v6284_v18  ;;  %8528 = vmatprep.mubr.msk.f32.mxu0 %vm9293_vm0, %v9294_v1 }
 0x969   : > { %8531 = vmatprep.subr.mxu0 %v9294_v1 }
 0x96f   : > { %8529 = vmatmul.mubr.f32.vlgmr.msra.gmra.mrb[26].mxu0 %v6273_v16 }
 0x970   : > { %8532 = vmatpush3.xpose.msra.mxu0 %v6207_v14  ;;  %8533 = vmatprep.mubr.msk.f32.mxu0 %vm9293_vm0, %v9294_v1 }
 0x971   : > { %8536 = vmatprep.subr.mxu0 %v9294_v1 }
 0x977   : > { %8534 = vmatmul.mubr.f32.vlgmr.msra.gmra.mrb[26].mxu0 %v6274_v17 }
 0x978   : > { %8537 = vmatpush3.xpose.msra.mxu0 %v6285_v19  ;;  %8538 = vmatprep.mubr.msk.f32.mxu0 %vm9293_vm0, %v9294_v1 }
 0x979   : > { %8541 = vmatprep.subr.mxu0 %v9294_v1 }
 0x97f   : > { %8539 = vmatmul.mubr.f32.vlgmr.msra.gmra.mrb[26].mxu0 %v6272_v13 }
 0x980   : > { %8542 = vmatpush3.xpose.msra.mxu0 %v6207_v14  ;;  %8543 = vmatprep.mubr.msk.f32.mxu0 %vm9293_vm0, %v9294_v1 }
 0x981   : > { %8576 = vmatprep.subr.mxu0 %v9294_v1 }
 0x987   : > { %8544 = vmatmul.mubr.f32.vlgmr.msra.gmra.mrb[26].mxu0 %v6272_v13 }
 0x988   : > { %8578 = vmatprep.mubr.msk.f32.mxu0 %vm9293_vm0, %v9294_v1  ;;  %8577 = vmatpush3.msra.mxu0 %v7121_v5 }
 0x989   : > { %8586 = vmatprep.subr.mxu0 %v9294_v1 }
 0xa1b   : > { %v5899_v25 = vpop.f32.mrb[22].mxu1 }
 0xa1c   : > { %v8495_v26 = vpop.f32.mrb[23].mxu1 }
 0xa1f   : > { %v6047_v28 = vpop.f32.mrb[24].mxu1 }
 0xa20   : > { %v8505_v29 = vpop.f32.mrb[25].mxu1 }
 0xa23   : > { %v5823_v30 = vpop.f32.mrb[20].mxu0  ;;  %v6193_v31 = vpop.f32.mrb[26].mxu1 }
 0xa24   : > { %v5900_v32 = vadd.f32 %v5899_v25, %v5823_v30  ;;  %v8490_v34 = vpop.f32.mrb[21].mxu0  ;;  %v8515_v35 = vpop.f32.mrb[27].mxu1 }
 0xa27   : > { %v5973_v36 = vpop.f32.mrb[22].mxu0 }
 0xa28   : > { %v5974_v38 = vadd.f32 %v5973_v36, %v5900_v32  ;;  %v8500_v39 = vpop.f32.mrb[23].mxu0 }
 0xa2a   : > { %v6048_v40 = vadd.f32 %v6047_v28, %v5974_v38 }
 0xa2b   : > { %v6121_v41 = vpop.f32.mrb[24].mxu0 }
 0xa2c   : > { %v6122_v43 = vadd.f32 %v6121_v41, %v6048_v40  ;;  %v8510_v44 = vpop.f32.mrb[25].mxu0  ;;  %v8965_v41 = vld [vmem:[%s501_s3] sm:$0xff] }
 0xa2e   : > { %v6194_v45 = vadd.f32 %v6193_v31, %v6122_v43 }
 0xa30   : > { %v10166_v46 = vadd.f32 %v6194_v45, %v10093_v33 }
 0xa5a   : > { %v6648_v47 = vpop.f32.mrb[26].mxu0 }
 0xa5b   : > { %v6652_v48 = vmul.f32 0.35355338, %v6648_v47  ;;  %v8545_v49 = vpop.f32.mrb[27].mxu0 }
 0xa5d   : > { %v6653_v51 = vadd.f32 %v9969_v27, %v6652_v48 }
 0xa5f   : > { %v6654_v52 = vsel %vm2090_vm2, %v6653_v51, -inf }
 0xa60   : > { %6655 = vmax.xlane.f32.xlu0 %v6654_v52 }
 0xaed   : > { %v6656_v42 = vpop.xlane.xlu0 %6655 }
 0xaee   : > { %v6657_v50 = vsub.f32 %v6653_v51, %v6656_v42 }
 0xaf0   : > { %v6658_v53 = vmul.f32 1.442695, %v6657_v50 }
 0xaf2   : > { %8959 = vpow2.f32 %v6658_v53  ;;  %v7808_v53 = vld [vmem:[%s10331_s12] ss:$0 sm:$0xff] }
 0xafc   : > { %v8960_v55 = vpop.eup %8959 }
 0xafd   : > { %v6660_v56 = vsel %vm2090_vm2, %v8960_v55, 0.0 }
 0xafe   : > { %6661 = vadd.xlane.f32.xlu1 %v6660_v56  ;;  %v7809_v56 = vld [vmem:[%s10332_s10] ss:$0 sm:$0xff] }
 0xb0f   : > { %6665 = vrot.lane.b32.xlu1 %v9954_v23, %s9297_s23  ;;  %s584_s23 = scalar_lea.vmem [#allocation16], %s9666_s5  ;;  %s9198_s5 = sshll.u32 %s9298_s14, 4  ;;  %s9199_s5 = int_to_ptr.vmem [resolvable:$false] %s9198_s5 }
 0xb10   : > { %s7621_s15 = sshll.u32 %s584_s23, 4  ;;  %s9200_s3 = scalar_lea.vmem %s9199_s5, 256  ;;  %s10229_s15 = int_to_ptr.vmem [resolvable:$true] %s7621_s15 }
 0xb11   : > { %p9201_p6 = scmp.lt.s32.totalorder %s10229_s15, %s9199_s5 }
 0xb8b   : > { %v6662_v33 = vpop.xlane.xlu1 %6661 }
 0xb8c   : > { %8961 = vrcp.f32 %v6662_v33 }
 0xb8f   : > { %v6666_v54 = vpop.permute.xlu1 %6665 }
 0xb90   : > { %v6672_v58 = vand.u32 4294901760, %v6666_v54 }
 0xb92   : > { %8547 = vmatpush3.msra.mxu1 %v6672_v58  ;;  %v6749_v57 = vsub.f32 %v6666_v54, %v6672_v58 }
 0xb93   : > { %8551 = vmatprep.subr.mxu1 %v9294_v1 }
 0xb94   : > { %v6750_v60 = vand.u32 4294901760, %v6749_v57 }
 0xb96   : > { %v8962_v27 = vpop.eup %8961  ;;  %v6751_v63 = vsub.f32 %v6749_v57, %v6750_v60 }
 0xb97   : > { %v6664_v0 = vmul.f32 %v8962_v27, %v8960_v55 }
 0xb98   : > { %v6752_v23 = vand.u32 4294901760, %v6751_v63 }
 0xb99   : > { %v6669_v37 = vsel %vm2090_vm2, %v6664_v0, 0 }
 0xb9a   : > { %v6737_v59 = vand.u32 4294901760, %v6669_v37 }
 0xb9c   : > { %v6738_v61 = vsub.f32 %v6669_v37, %v6737_v59 }
 0xb9e   : > { %v6739_v62 = vand.u32 4294901760, %v6738_v61 }
 0xba0   : > { %v6740_v2 = vsub.f32 %v6738_v61, %v6739_v62 }
 0xba2   : > { %v6741_v3 = vand.u32 4294901760, %v6740_v2 }
 0xba4   : > { %8549 = vmatmul.mubr.f32.vlgmr.msra.gmra.mrb[28].mxu1 %v6741_v3 }
 0xba5   : > { %8552 = vmatpush3.msra.mxu1 %v6752_v23  ;;  %8553 = vmatprep.mubr.msk.f32.mxu1 %vm9293_vm0, %v9294_v1 }
 0xba6   : > { %8556 = vmatprep.subr.mxu1 %v9294_v1 }
 0xbac   : > { %8554 = vmatmul.mubr.f32.vlgmr.msra.gmra.mrb[28].mxu1 %v6737_v59 }
 0xbad   : > { %8557 = vmatpush3.msra.mxu1 %v6749_v57  ;;  %8558 = vmatprep.mubr.msk.f32.mxu1 %vm9293_vm0, %v9294_v1 }
 0xbae   : > { %8561 = vmatprep.subr.mxu1 %v9294_v1 }
 0xbb4   : > { %8559 = vmatmul.mubr.f32.vlgmr.msra.gmra.mrb[28].mxu1 %v6738_v61 }
 0xbb5   : > { %8562 = vmatpush3.msra.mxu1 %v6672_v58  ;;  %8563 = vmatprep.mubr.msk.f32.mxu1 %vm9293_vm0, %v9294_v1 }
 0xbb6   : > { %8566 = vmatprep.subr.mxu1 %v9294_v1 }
 0xbbc   : > { %8564 = vmatmul.mubr.f32.vlgmr.msra.gmra.mrb[28].mxu1 %v6739_v62 }
 0xbbd   : > { %8567 = vmatpush3.msra.mxu1 %v6750_v60  ;;  %8568 = vmatprep.mubr.msk.f32.mxu1 %vm9293_vm0, %v9294_v1 }
 0xbbe   : > { %8571 = vmatprep.subr.mxu1 %v9294_v1 }
 0xbc4   : > { %8569 = vmatmul.mubr.f32.vlgmr.msra.gmra.mrb[28].mxu1 %v6737_v59 }
 0xbc5   : > { %8572 = vmatpush3.msra.mxu1 %v6672_v58  ;;  %8573 = vmatprep.mubr.msk.f32.mxu1 %vm9293_vm0, %v9294_v1 }
 0xbc6   : > { %8581 = vmatprep.subr.mxu1 %v9294_v1 }
 0xbcc   : > { %8574 = vmatmul.mubr.f32.vlgmr.msra.gmra.mrb[28].mxu1 %v6737_v59 }
 0xbcd   : > { %8583 = vmatprep.mubr.msk.f32.mxu1 %vm9293_vm0, %v9294_v1  ;;  %8582 = vmatpush3.msra.mxu1 %v7201_v9 }
 0xbce   : > { %8591 = vmatprep.subr.mxu1 %v9294_v1 }
 0xc9f   : > { %v7113_v10 = vpop.f32.mrb[28].mxu1 }
 0xca0   : > { %v7118_v11 = vsel %vm2090_vm2, %v7113_v10, 0  ;;  %v8575_v12 = vpop.f32.mrb[29].mxu1 }
 0xca1   : > { %v7186_v13 = vand.u32 4294901760, %v7118_v11 }
 0xca3   : > { %v7187_v14 = vsub.f32 %v7118_v11, %v7186_v13  ;;  %8584 = vmatmul.mubr.f32.vlgmr.msra.gmra.mrb[30].mxu1 %v7186_v13 }
 0xca4   : > { %8592 = vmatpush3.msra.mxu1 %v7121_v5  ;;  %8593 = vmatprep.mubr.msk.f32.mxu1 %vm9293_vm0, %v9294_v1 }
 0xca5   : > { %v7188_v15 = vand.u32 4294901760, %v7187_v14  ;;  %8601 = vmatprep.subr.mxu1 %v9294_v1 }
 0xca7   : > { %v7189_v16 = vsub.f32 %v7187_v14, %v7188_v15  ;;  %8594 = vmatmul.mubr.f32.vlgmr.msra.gmra.mrb[32].mxu1 %v7188_v15 }
 0xca8   : > { %8602 = vmatpush3.msra.mxu1 %v7121_v5  ;;  %8603 = vmatprep.mubr.msk.f32.mxu1 %vm9293_vm0, %v9294_v1 }
 0xca9   : > { %v7190_v18 = vand.u32 4294901760, %v7189_v16 }
 0xcab   : > { %8579 = vmatmul.mubr.f32.vlgmr.msra.gmra.mrb[28].mxu0 %v7190_v18  ;;  %8604 = vmatmul.mubr.f32.vlgmr.msra.gmra.mrb[34].mxu1 %v7186_v13 }
 0xcac   : > { %8587 = vmatpush3.msra.mxu0 %v7198_v6  ;;  %8588 = vmatprep.mubr.msk.f32.mxu0 %vm9293_vm0, %v9294_v1 }
 0xcad   : > { %8596 = vmatprep.subr.mxu0 %v9294_v1 }
 0xcaf   : > { %8589 = vmatmul.mubr.f32.vlgmr.msra.gmra.mrb[30].mxu0 %v7187_v14 }
 0xcb0   : > { %8597 = vmatpush3.msra.mxu0 %v7199_v7  ;;  %8598 = vmatprep.mubr.msk.f32.mxu0 %vm9293_vm0, %v9294_v1  ;;  %v7807_v1 = vld [vmem:[%s10330_s30] ss:$0 sm:$0xff]  ;;  %s9194_s30 = scalar_lea.vmem %s10229_s15, 128 }
 0xcb1   : > { %p9195_p10 = scmp.ne.s32.totalorder %s10229_s15, %s9194_s30  ;;  %p9202_p11 = scmp.lt.s32.totalorder %s9200_s3, %s9194_s30 }
 0xcb3   : > { %8599 = vmatmul.mubr.f32.vlgmr.msra.gmra.mrb[32].mxu0 %v7186_v13  ;;  %p9196_p7 = pnand %p9195_p10, %p10334_p5  ;;  %p9203_p8 = por %p9202_p11, %p9201_p6 }
 0xcb5   : > { %p9197_p3 = pneg %p9196_p7 }
 0xcb7   : > { %p9204_p9 = pnand %p9203_p8, %p9197_p3 }
 0xd76   : > { %v7268_v17 = vpop.f32.mrb[30].mxu1 }
 0xd77   : > { %v8585_v19 = vpop.f32.mrb[31].mxu1 }
 0xd7a   : > { %v7416_v20 = vpop.f32.mrb[32].mxu1 }
 0xd7b   : > { %v8595_v21 = vpop.f32.mrb[33].mxu1 }
 0xd7e   : > { %v7192_v22 = vpop.f32.mrb[28].mxu0  ;;  %v7562_v24 = vpop.f32.mrb[34].mxu1 }
 0xd7f   : > { %v7269_v25 = vadd.f32 %v7268_v17, %v7192_v22  ;;  %v8580_v26 = vpop.f32.mrb[29].mxu0  ;;  %v8605_v28 = vpop.f32.mrb[35].mxu1 }
 0xd82   : > { %v7342_v29 = vpop.f32.mrb[30].mxu0 }
 0xd83   : > { %v7343_v30 = vadd.f32 %v7342_v29, %v7269_v25  ;;  %v8590_v31 = vpop.f32.mrb[31].mxu0 }
 0xd85   : > { %v7417_v32 = vadd.f32 %v7416_v20, %v7343_v30 }
 0xd86   : > { %v7490_v34 = vpop.f32.mrb[32].mxu0 }
 0xd87   : > { %v7491_v35 = vadd.f32 %v7490_v34, %v7417_v32  ;;  %v8600_v36 = vpop.f32.mrb[33].mxu0 }
 0xd89   : > { %v7563_v38 = vadd.f32 %v7562_v24, %v7491_v35 }
 0xd8b   : > { %v7566_v39 = vadd.f32 %v7563_v38, %v10166_v46 }
 0xd8d   : > { %v7574_v40 = vadd.f32 %v7807_v1, %v7566_v39 }
 0xd8f   : > { %v7575_v43 = vadd.f32 %v8965_v41, %v7574_v40 }
 0xd91   : > { %v7578_v44 = vsel %vm602_vm1, %v7575_v43, 0.0 }
 0xd92   : > { %7579 = vadd.xlane.f32.xlu1 %v7578_v44 }
 0xe1f   : > { %v7580_v45 = vpop.xlane.xlu1 %7579 }
 0xe20   : > { %v7582_v47 = vmul.f32 0.03125, %v7580_v45 }
 0xe22   : > { %v7583_v48 = vsub.f32 %v7575_v43, %v7582_v47 }
 0xe24   : > { %v7584_v49 = vmul.f32 %v7583_v48, %v7583_v48 }
 0xe26   : > { %v7585_v51 = vsel %vm602_vm1, %v7584_v49, 0.0 }
 0xe27   : > { %7586 = vadd.xlane.f32.xlu0 %v7585_v51 }
 0xeb4   : > { %v7587_v52 = vpop.xlane.xlu0 %7586 }
 0xeb5   : > { %v7588_v42 = vmul.f32 0.03125, %v7587_v52 }
 0xeb7   : > { %v7589_v46 = vadd.f32 1e-12, %v7588_v42 }
 0xeb9   : > { %8963 = vrsqrt.f32 %v7589_v46 }
 0xec3   : > { %v8964_v50 = vpop.eup %8963 }
 0xec4   : > { %v7591_v55 = vmul.f32 %v8964_v50, %v7583_v48 }
 0xec6   : > { %v7598_v33 = vmul.f32 %v7808_v53, %v7591_v55 }
 0xec8   : > { %v7605_v54 = vadd.f32 %v7809_v56, %v7598_v33 }
 0xeca   : > { %7606 = vst.msk [vmem:[%s584_s23] sm:$0xff] %vm602_vm1, %v7605_v54 }
 0xecb   : > { %9207 = shalt.err (!%p9204_p9)
}
 0xecc   : > { %s9208_s29 = scalar_lea.hbm %s10227_s6, 128  ;;  %s9212_s7 = scalar_lea.hbm %s10333_s24, 256 }
 0xecd   : > { %p9209_p12 = scmp.ne.s32.totalorder %s10227_s6, %s9208_s29  ;;  %p9213_p0 = scmp.lt.u32.totalorder %s10227_s6, %s10333_s24 }
 0xece   : > { %p9214_p2 = scmp.lt.u32.totalorder %s9212_s7, %s9208_s29  ;;  %p9216_p10 = scmp.lt.u32.totalorder %s9208_s29, %s10227_s6 }
 0xecf   : > { %p9210_p1 = pnand %p9209_p12, %p10334_p5 }
 0xed0   : > { %p9215_p4 = por %p9214_p2, %p9213_p0 }
 0xed1   : > { %p9211_p13 = pneg %p9210_p1 }
 0xed2   : > { %p9217_p7 = por %p9216_p10, %p9215_p4 }
 0xed4   : > { %p9218_p3 = pnand %p9217_p7, %p9211_p13 }
 0xed6   : > { %9221 = shalt.err (!%p9218_p3)
}
 0xed7   : > { %8855 = dma.vmem_to_hbm [thread:$0]  (%p10334_p5), %s10229_s15, 128, %s10227_s6, %s7608_s21  }
 0xed8 PF: > { %s7633_s16 = sand.u32 1, %s9268_s25   ;;  %p10335_p6 = scmp.ne.s32.totalorder %s10317_s11, 0 }
 0xed9   : > { %p10336_p11 = scmp.ge.s32.totalorder %s9280_s28, 2  ;;  %s7634_s23 = scalar_lea.sflag [#allocation4], %s7633_s16 }
 0xedb   : > { %p8884_p8 = pnand %p10336_p11, %p10335_p6 }
 0xedd   : > { %9263 = dma.done.wait (!%p8884_p8), %s7634_s23, 128  }
 0xede   : > { %9265 = vsyncadd (!%p8884_p8), %s7634_s23, 4294967168  ;;  %p32_p9 = scmp.ge.s32.totalorder %s9556_s18, 4   ;;  %s10337_s25 = smov %s9272_s26 }
 0xedf   : > { %s10338_s26 = smov %s9276_s27  ;;  %s10339_s27 = smov %s9567_s19 }
 0xee0   : > { %s10340_s28 = smov %s9556_s18  ;;  %34 = sbr.rel (!%p32_p9) target bundleno = 21 (0x15), region = 157 }
 0xee7   :  { %7639 = vsyncpa [#allocation3], 1 }
 0xee8   :  { %7641 = vsyncpa [#allocation3 + $0x1], 1 }
 0xee9   :  { %7642 = vsyncpa [#allocation6], 1 }
 0xeea   :  { %7644 = vsyncpa [#allocation6 + $0x1], 1 }
 0xeeb   :  { %7645 = vsyncpa [#allocation9], 1 }
 0xeec   :  { %7646 = vsyncpa [#allocation12], 1 }
 0xeed   :  { %7647 = vsyncpa [#allocation15], 1 }
 0xeee   :  { %7648 = vsyncpa [#allocation4], 1 }
 0xeef   :  { %7650 = vsyncpa [#allocation4 + $0x1], 1 }

</bundles_post_ra>
